<compile_context>
chip_gen: v7x
topology: tpu7x:2x2x1
jax: 0.10.0
libtpu: 0.0.40
codegen_flags: <defaults>
</compile_context>

<pallas_src>
import jax
import jax.numpy as jnp
from jax.experimental import pallas as pl
from jax.experimental.pallas import tpu as pltpu

H1 = 100   # gc1 output dim (as in the PyTorch module)
H2 = 20    # gc2 output dim
FC1 = 10   # fc1 output dim


def net_forward(adj, feat, self_feat, params, *, bt=32,
                compute_dtype=jnp.float32):
    """adj: (B,N,N), feat: (B,N,DIN), self_feat: (B,DSF) -> (B,DOUT)."""
    w1, b1, w2, b2, wf1_flat, bf1, wf2, bf2 = params
    B, N, DIN = feat.shape
    DSF = self_feat.shape[1]
    H1r = w1.shape[1]
    H2r = w2.shape[1]
    FC1r = wf1_flat.shape[1]
    DOUT = wf2.shape[1]

    # ---- host-side parameter massaging (tiny, one-off) ----------------------
    # Pad gc1 width to the native 128-lane width: relu(0)=0 and the matching w2
    # rows are zero, so results are unchanged.
    h1p = ((H1r + 127) // 128) * 128
    w1p = jnp.pad(w1, ((0, 0), (0, h1p - H1r)))
    b1p = jnp.pad(b1, ((0, 0), (0, h1p - H1r)))
    w2p = jnp.pad(w2, ((0, h1p - H1r), (0, 0)))
    # fc1 weight regrouped as (H2, DSF*FC1) with column index j*FC1 + k, so the
    # kernel computes flat@Wfc1 as one matmul + per-j lane-slice scaling.
    wcat = wf1_flat.reshape(H2r, DSF, FC1r).reshape(H2r, DSF * FC1r)

    # ---- batch tiling --------------------------------------------------------
    bt = max(1, min(bt, B))
    bp = ((B + bt - 1) // bt) * bt     # padded batch
    g = bp // bt                        # grid length
    if bp != B:
        pad = bp - B
        adj = jnp.pad(adj, ((0, pad), (0, 0), (0, 0)))
        feat = jnp.pad(feat, ((0, pad), (0, 0), (0, 0)))
        self_feat = jnp.pad(self_feat, ((0, pad), (0, 0)))

    cd = compute_dtype

    def kernel(a_ref, x_ref, sf_ref, w1_ref, b1_ref, w2_ref, b2_ref,
               wc_ref, bf1_ref, wf2_ref, bf2_ref, out_ref):
        A = a_ref[...].astype(cd)                          # (bt, N, N)

        # --- gc1: relu(A @ (X @ W1) + b1)   (reassociated; exact by linearity)
        xw1 = jnp.dot(x_ref[...].reshape(bt * N, DIN).astype(cd),
                      w1_ref[...].astype(cd),
                      preferred_element_type=jnp.float32).reshape(bt, N, h1p)
        m1 = jnp.einsum('bij,bjh->bih', A, xw1.astype(cd),
                        preferred_element_type=jnp.float32)
        h1 = jnp.maximum(m1 + b1_ref[...], 0.0)            # (bt, N, h1p) f32

        # --- gc2: relu(A @ (h1 @ W2) + b2)
        hw2 = jnp.dot(h1.reshape(bt * N, h1p).astype(cd),
                      w2_ref[...].astype(cd),
                      preferred_element_type=jnp.float32).reshape(bt, N, H2r)
        m2 = jnp.einsum('bij,bjh->bih', A, hw2.astype(cd),
                        preferred_element_type=jnp.float32)
        h2 = jnp.maximum(m2 + b2_ref[...], 0.0)            # (bt, N, H2)

        # --- dgl.mean_nodes over the node axis
        hg = jnp.mean(h2, axis=1)                          # (bt, H2)

        # --- fc1 over the flattened outer product hg x self_feat:
        #   flat @ Wfc1 == sum_j sf[:, j] * (hg @ Wcat)[:, j*FC1:(j+1)*FC1]
        # (one MXU matmul; avoids an in-kernel sublane->lane reshape)
        sf = sf_ref[...]                                   # (bt, DSF) f32
        p = jnp.dot(hg.astype(cd), wc_ref[...].astype(cd),
                    preferred_element_type=jnp.float32)    # (bt, DSF*FC1)
        o1p = sf[:, 0:1] * p[:, 0:FC1r]
        for j in range(1, DSF):                            # tiny static unroll
            o1p = o1p + sf[:, j:j + 1] * p[:, j * FC1r:(j + 1) * FC1r]
        o1 = jnp.maximum(o1p + bf1_ref[...], 0.0)          # (bt, FC1)

        # --- fc2
        o2 = jnp.dot(o1.astype(cd), wf2_ref[...].astype(cd),
                     preferred_element_type=jnp.float32) + bf2_ref[...]

        # lane-dense output slab (DOUT, bt); the wrapper transposes back.
        out_ref[0] = o2.T.astype(out_ref.dtype)

    def full_spec(shape):
        n = len(shape)
        return pl.BlockSpec(shape, lambda i, n=n: (0,) * n)

    grid_spec = pltpu.PrefetchScalarGridSpec(
        num_scalar_prefetch=0,
        grid=(g,),
        in_specs=[
            pl.BlockSpec((bt, N, N), lambda i: (i, 0, 0)),        # adj
            pl.BlockSpec((bt, N, DIN), lambda i: (i, 0, 0)),      # feat
            pl.BlockSpec((bt, DSF), lambda i: (i, 0)),            # self_feat
            full_spec((DIN, h1p)), full_spec((1, h1p)),           # gc1 linear (padded)
            full_spec((h1p, H2r)), full_spec((1, H2r)),           # gc2 linear
            full_spec((H2r, DSF * FC1r)), full_spec((1, FC1r)),   # fc1 (regrouped)
            full_spec((FC1r, DOUT)), full_spec((1, DOUT)),        # fc2
        ],
        out_specs=pl.BlockSpec((1, DOUT, bt), lambda i: (i, 0, 0)),
    )

    flops = 2 * bp * (N * DIN * h1p + N * N * h1p + N * h1p * H2r
                      + N * N * H2r + H2r * DSF * FC1r + FC1r * DOUT)
    bytes_accessed = 4 * int(adj.size + feat.size + self_feat.size + bp * DOUT
                             + w1p.size + b1p.size + w2p.size + b2.size
                             + wcat.size + bf1.size + wf2.size + bf2.size)

    out = pl.pallas_call(
        kernel,
        out_shape=jax.ShapeDtypeStruct((g, DOUT, bt), jnp.float32),
        grid_spec=grid_spec,
        compiler_params=pltpu.CompilerParams(
            dimension_semantics=("parallel",)),
        cost_estimate=pl.CostEstimate(flops=flops, transcendentals=0,
                                      bytes_accessed=bytes_accessed),
    )(adj, feat, self_feat, w1p, b1p, w2p, b2, wcat, bf1, wf2, bf2)

    return out.transpose(0, 2, 1).reshape(bp, DOUT)[:B]


def init_params(key, dim_in, dim_out, dim_self_feat):
    """Deterministic PyTorch-Linear-style init (weights stored as (fan_in, fan_out))."""
    ks = jax.random.split(key, 4)

    def lin(k, fi, fo):
        bound = 1.0 / (fi ** 0.5)
        kw, kb = jax.random.split(k)
        w = jax.random.uniform(kw, (fi, fo), jnp.float32, -bound, bound)
        b = jax.random.uniform(kb, (1, fo), jnp.float32, -bound, bound)
        return w, b

    w1, b1 = lin(ks[0], dim_in, H1)
    w2, b2 = lin(ks[1], H1, H2)
    # flat index of the outer product is i*DSF + j, matching torch's view()
    wf1, bf1 = lin(ks[2], H2 * dim_self_feat, FC1)
    wf2, bf2 = lin(ks[3], FC1, dim_out)
    return (w1, b1, w2, b2, wf1, bf1, wf2, bf2)


def reference(adj, feat, self_feat, params):
    """Pure-JAX reference matching the PyTorch forward."""
    w1, b1, w2, b2, wf1, bf1, wf2, bf2 = params
    h1 = jax.nn.relu(jnp.einsum('bij,bjd->bid', adj, feat) @ w1 + b1)
    h2 = jax.nn.relu(jnp.einsum('bij,bjd->bid', adj, h1) @ w2 + b2)
    hg = h2.mean(axis=1)                                   # (B, H2)
    outer = hg[:, :, None] * self_feat[:, None, :]         # (B, H2, DSF)
    flat = outer.reshape(outer.shape[0], -1)               # (B, H2*DSF)
    o1 = jax.nn.relu(flat @ wf1 + bf1)
    return o1 @ wf2 + bf2


if __name__ == "__main__":
    B, N = 64, 8           # 64 graphs (BT=32 per grid step -> grid of 2), 8 nodes each
    DIN, DOUT, DSF = 16, 4, 4

    key = jax.random.PRNGKey(0)
    k_adj, k_feat, k_sf, k_par = jax.random.split(key, 4)

    # random directed graph; self-loops keep every node's in-degree >= 1 so the
    # DGL "nodes without messages" corner case never arises.
    raw = (jax.random.uniform(k_adj, (B, N, N)) < 0.4).astype(jnp.float32)
    a = jnp.maximum(raw, jnp.eye(N, dtype=jnp.float32)[None])
    adj = a / jnp.sum(a, axis=2, keepdims=True)   # row-normalize -> mean over in-neighbors

    feat = jax.random.normal(k_feat, (B, N, DIN), jnp.float32)
    self_feat = jax.random.normal(k_sf, (B, DSF), jnp.float32)
    params = init_params(k_par, DIN, DOUT, DSF)

    ref = reference(adj, feat, self_feat, params)

    # f32 MXU path (exact up to matmul reassociation)
    out = jax.block_until_ready(net_forward(adj, feat, self_feat, params, bt=32))
    assert out.shape == (B, DOUT)
    assert jnp.allclose(out, ref, atol=1e-3, rtol=1e-3), (out, ref)

    # bf16 MXU-input path (f32 accumulation) for v6e/v7x throughput; looser
    # tolerance since the strict check is the f32 one above.
    out_bf16 = jax.block_until_ready(
        net_forward(adj, feat, self_feat, params, bt=32,
                    compute_dtype=jnp.bfloat16))
    assert jnp.allclose(out_bf16, ref, atol=1e-1, rtol=1e-1), (out_bf16, ref)

    print("KERNEL_OK")
</pallas_src>

<mosaic_0001>
module attributes {stable_mosaic.version = 11 : i64} {
  func.func @kernel(%arg0: i32, %arg1: memref<32x8x8xf32, #tpu.memory_space<vmem>>, %arg2: memref<32x8x16xf32, #tpu.memory_space<vmem>>, %arg3: memref<32x4xf32, #tpu.memory_space<vmem>>, %arg4: memref<16x128xf32, #tpu.memory_space<vmem>>, %arg5: memref<1x128xf32, #tpu.memory_space<vmem>>, %arg6: memref<128x20xf32, #tpu.memory_space<vmem>>, %arg7: memref<1x20xf32, #tpu.memory_space<vmem>>, %arg8: memref<20x40xf32, #tpu.memory_space<vmem>>, %arg9: memref<1x10xf32, #tpu.memory_space<vmem>>, %arg10: memref<10x4xf32, #tpu.memory_space<vmem>>, %arg11: memref<1x4xf32, #tpu.memory_space<vmem>>, %arg12: memref<1x4x32xf32, #tpu.memory_space<vmem>>) attributes {dimension_semantics = [#tpu.dimension_semantics<parallel>], iteration_bounds = array<i64: 2>, scalar_prefetch = 0 : i64, scratch_operands = 0 : i64, tpu.core_type = #tpu.core_type<tc>, window_params = [{transform_indices = @transform_0, window_bounds = array<i64: 32, 8, 8>}, {transform_indices = @transform_1, window_bounds = array<i64: 32, 8, 16>}, {transform_indices = @transform_2, window_bounds = array<i64: 32, 4>}, {pipeline_mode = #tpu.pipeline_mode<synchronous>, transform_indices = @transform_3, window_bounds = array<i64: 16, 128>}, {pipeline_mode = #tpu.pipeline_mode<synchronous>, transform_indices = @transform_4, window_bounds = array<i64: 1, 128>}, {pipeline_mode = #tpu.pipeline_mode<synchronous>, transform_indices = @transform_5, window_bounds = array<i64: 128, 20>}, {pipeline_mode = #tpu.pipeline_mode<synchronous>, transform_indices = @transform_6, window_bounds = array<i64: 1, 20>}, {pipeline_mode = #tpu.pipeline_mode<synchronous>, transform_indices = @transform_7, window_bounds = array<i64: 20, 40>}, {pipeline_mode = #tpu.pipeline_mode<synchronous>, transform_indices = @transform_8, window_bounds = array<i64: 1, 10>}, {pipeline_mode = #tpu.pipeline_mode<synchronous>, transform_indices = @transform_9, window_bounds = array<i64: 10, 4>}, {pipeline_mode = #tpu.pipeline_mode<synchronous>, transform_indices = @transform_10, window_bounds = array<i64: 1, 4>}, {transform_indices = @transform_11, window_bounds = array<i64: 1, 4, 32>}]} {
    %c0 = arith.constant 0 : index
    %c0_0 = arith.constant 0 : index
    %c0_1 = arith.constant 0 : index
    %0 = vector.load %arg1[%c0, %c0_0, %c0_1] : memref<32x8x8xf32, #tpu.memory_space<vmem>>, vector<32x8x8xf32>
    %c0_2 = arith.constant 0 : index
    %c0_3 = arith.constant 0 : index
    %c0_4 = arith.constant 0 : index
    %1 = vector.load %arg2[%c0_2, %c0_3, %c0_4] : memref<32x8x16xf32, #tpu.memory_space<vmem>>, vector<32x8x16xf32>
    %2 = vector.shape_cast %1 : vector<32x8x16xf32> to vector<256x16xf32>
    %c0_5 = arith.constant 0 : index
    %c0_6 = arith.constant 0 : index
    %3 = vector.load %arg4[%c0_5, %c0_6] : memref<16x128xf32, #tpu.memory_space<vmem>>, vector<16x128xf32>
    %cst = arith.constant dense<0.000000e+00> : vector<256x128xf32>
    %4 = tpu.matmul %2, %3, %cst {dimension_numbers = #tpu.dot_dimension_numbers<[1], [0], [0], [1], [0, 0, 1, 1], [], []>} : vector<256x16xf32>, vector<16x128xf32>, vector<256x128xf32> -> vector<256x128xf32>
    %5 = vector.shape_cast %4 : vector<256x128xf32> to vector<32x8x128xf32>
    "tpu.trace_start"() <{level = 10 : i32, message = "bij,bjh->bih"}> : () -> ()
    %cst_7 = arith.constant dense<0.000000e+00> : vector<32x8x128xf32>
    %6 = tpu.matmul %0, %5, %cst_7 {dimension_numbers = #tpu.dot_dimension_numbers<[2], [1], [1], [2], [0, 0, 0, 1, 1, 2], [0], [0]>} : vector<32x8x8xf32>, vector<32x8x128xf32>, vector<32x8x128xf32> -> vector<32x8x128xf32>
    "tpu.trace_stop"() : () -> ()
    %c0_8 = arith.constant 0 : index
    %c0_9 = arith.constant 0 : index
    %7 = vector.load %arg5[%c0_8, %c0_9] : memref<1x128xf32, #tpu.memory_space<vmem>>, vector<1x128xf32>
    %8 = vector.shape_cast %7 : vector<1x128xf32> to vector<1x1x128xf32>
    %9 = vector.broadcast %8 : vector<1x1x128xf32> to vector<32x8x128xf32>
    %10 = arith.addf %6, %9 : vector<32x8x128xf32>
    %cst_10 = arith.constant 0.000000e+00 : f32
    %11 = vector.broadcast %cst_10 : f32 to vector<32x8x128xf32>
    %12 = arith.maximumf %10, %11 : vector<32x8x128xf32>
    %13 = vector.shape_cast %12 : vector<32x8x128xf32> to vector<256x128xf32>
    %c0_11 = arith.constant 0 : index
    %c0_12 = arith.constant 0 : index
    %14 = vector.load %arg6[%c0_11, %c0_12] : memref<128x20xf32, #tpu.memory_space<vmem>>, vector<128x20xf32>
    %cst_13 = arith.constant dense<0.000000e+00> : vector<256x20xf32>
    %15 = tpu.matmul %13, %14, %cst_13 {dimension_numbers = #tpu.dot_dimension_numbers<[1], [0], [0], [1], [0, 0, 1, 1], [], []>} : vector<256x128xf32>, vector<128x20xf32>, vector<256x20xf32> -> vector<256x20xf32>
    %16 = vector.shape_cast %15 : vector<256x20xf32> to vector<32x8x20xf32>
    "tpu.trace_start"() <{level = 10 : i32, message = "bij,bjh->bih"}> : () -> ()
    %cst_14 = arith.constant dense<0.000000e+00> : vector<32x8x20xf32>
    %17 = tpu.matmul %0, %16, %cst_14 {dimension_numbers = #tpu.dot_dimension_numbers<[2], [1], [1], [2], [0, 0, 0, 1, 1, 2], [0], [0]>} : vector<32x8x8xf32>, vector<32x8x20xf32>, vector<32x8x20xf32> -> vector<32x8x20xf32>
    "tpu.trace_stop"() : () -> ()
    %c0_15 = arith.constant 0 : index
    %c0_16 = arith.constant 0 : index
    %18 = vector.load %arg7[%c0_15, %c0_16] : memref<1x20xf32, #tpu.memory_space<vmem>>, vector<1x20xf32>
    %19 = vector.shape_cast %18 : vector<1x20xf32> to vector<1x1x20xf32>
    %20 = vector.broadcast %19 : vector<1x1x20xf32> to vector<32x8x20xf32>
    %21 = arith.addf %17, %20 : vector<32x8x20xf32>
    %cst_17 = arith.constant 0.000000e+00 : f32
    %22 = vector.broadcast %cst_17 : f32 to vector<32x8x20xf32>
    %23 = arith.maximumf %21, %22 : vector<32x8x20xf32>
    %cst_18 = arith.constant dense<0.000000e+00> : vector<32x20xf32>
    %24 = vector.multi_reduction <add>, %23, %cst_18 [1] : vector<32x8x20xf32> to vector<32x20xf32>
    %cst_19 = arith.constant 8.000000e+00 : f32
    %25 = vector.broadcast %cst_19 : f32 to vector<32x20xf32>
    %26 = arith.divf %24, %25 : vector<32x20xf32>
    %c0_20 = arith.constant 0 : index
    %c0_21 = arith.constant 0 : index
    %27 = vector.load %arg3[%c0_20, %c0_21] : memref<32x4xf32, #tpu.memory_space<vmem>>, vector<32x4xf32>
    %c0_22 = arith.constant 0 : index
    %c0_23 = arith.constant 0 : index
    %28 = vector.load %arg8[%c0_22, %c0_23] : memref<20x40xf32, #tpu.memory_space<vmem>>, vector<20x40xf32>
    %cst_24 = arith.constant dense<0.000000e+00> : vector<32x40xf32>
    %29 = tpu.matmul %26, %28, %cst_24 {dimension_numbers = #tpu.dot_dimension_numbers<[1], [0], [0], [1], [0, 0, 1, 1], [], []>} : vector<32x20xf32>, vector<20x40xf32>, vector<32x40xf32> -> vector<32x40xf32>
    %30 = vector.extract_strided_slice %27 {offsets = [0, 0], sizes = [32, 1], strides = [1, 1]} : vector<32x4xf32> to vector<32x1xf32>
    %31 = vector.extract_strided_slice %29 {offsets = [0, 0], sizes = [32, 10], strides = [1, 1]} : vector<32x40xf32> to vector<32x10xf32>
    %32 = vector.broadcast %30 : vector<32x1xf32> to vector<32x10xf32>
    %33 = arith.mulf %32, %31 : vector<32x10xf32>
    %34 = vector.extract_strided_slice %27 {offsets = [0, 1], sizes = [32, 1], strides = [1, 1]} : vector<32x4xf32> to vector<32x1xf32>
    %35 = vector.extract_strided_slice %29 {offsets = [0, 10], sizes = [32, 10], strides = [1, 1]} : vector<32x40xf32> to vector<32x10xf32>
    %36 = vector.broadcast %34 : vector<32x1xf32> to vector<32x10xf32>
    %37 = arith.mulf %36, %35 : vector<32x10xf32>
    %38 = arith.addf %33, %37 : vector<32x10xf32>
    %39 = vector.extract_strided_slice %27 {offsets = [0, 2], sizes = [32, 1], strides = [1, 1]} : vector<32x4xf32> to vector<32x1xf32>
    %40 = vector.extract_strided_slice %29 {offsets = [0, 20], sizes = [32, 10], strides = [1, 1]} : vector<32x40xf32> to vector<32x10xf32>
    %41 = vector.broadcast %39 : vector<32x1xf32> to vector<32x10xf32>
    %42 = arith.mulf %41, %40 : vector<32x10xf32>
    %43 = arith.addf %38, %42 : vector<32x10xf32>
    %44 = vector.extract_strided_slice %27 {offsets = [0, 3], sizes = [32, 1], strides = [1, 1]} : vector<32x4xf32> to vector<32x1xf32>
    %45 = vector.extract_strided_slice %29 {offsets = [0, 30], sizes = [32, 10], strides = [1, 1]} : vector<32x40xf32> to vector<32x10xf32>
    %46 = vector.broadcast %44 : vector<32x1xf32> to vector<32x10xf32>
    %47 = arith.mulf %46, %45 : vector<32x10xf32>
    %48 = arith.addf %43, %47 : vector<32x10xf32>
    %c0_25 = arith.constant 0 : index
    %c0_26 = arith.constant 0 : index
    %49 = vector.load %arg9[%c0_25, %c0_26] : memref<1x10xf32, #tpu.memory_space<vmem>>, vector<1x10xf32>
    %50 = vector.broadcast %49 : vector<1x10xf32> to vector<32x10xf32>
    %51 = arith.addf %48, %50 : vector<32x10xf32>
    %cst_27 = arith.constant 0.000000e+00 : f32
    %52 = vector.broadcast %cst_27 : f32 to vector<32x10xf32>
    %53 = arith.maximumf %51, %52 : vector<32x10xf32>
    %c0_28 = arith.constant 0 : index
    %c0_29 = arith.constant 0 : index
    %54 = vector.load %arg10[%c0_28, %c0_29] : memref<10x4xf32, #tpu.memory_space<vmem>>, vector<10x4xf32>
    %cst_30 = arith.constant dense<0.000000e+00> : vector<32x4xf32>
    %55 = tpu.matmul %53, %54, %cst_30 {dimension_numbers = #tpu.dot_dimension_numbers<[1], [0], [0], [1], [0, 0, 1, 1], [], []>} : vector<32x10xf32>, vector<10x4xf32>, vector<32x4xf32> -> vector<32x4xf32>
    %c0_31 = arith.constant 0 : index
    %c0_32 = arith.constant 0 : index
    %56 = vector.load %arg11[%c0_31, %c0_32] : memref<1x4xf32, #tpu.memory_space<vmem>>, vector<1x4xf32>
    %57 = vector.broadcast %56 : vector<1x4xf32> to vector<32x4xf32>
    %58 = arith.addf %55, %57 : vector<32x4xf32>
    %59 = tpu.transpose %58, [1, 0] : vector<32x4xf32> -> vector<4x32xf32>
    %c0_33 = arith.constant 0 : index
    %c0_34 = arith.constant 0 : index
    %c0_35 = arith.constant 0 : index
    %60 = vector.load %arg12[%c0_33, %c0_34, %c0_35] : memref<1x4x32xf32, #tpu.memory_space<vmem>>, vector<1x4x32xf32>
    %61 = vector.shape_cast %60 : vector<1x4x32xf32> to vector<4x32xf32>
    %62 = vector.shape_cast %59 : vector<4x32xf32> to vector<1x4x32xf32>
    tpu.vector_store %arg12[%c0_33, %c0_34, %c0_35], %62 {strides = array<i32>} : memref<1x4x32xf32, #tpu.memory_space<vmem>>, vector<1x4x32xf32>,
    return
  }
  func.func @transform_0(%arg0: i32) -> (i32, i32, i32) {
    %c0_i32 = arith.constant 0 : i32
    %c0_i32_0 = arith.constant 0 : i32
    %c0_i32_1 = arith.constant 0 : i32
    return %arg0, %c0_i32, %c0_i32_0 : i32, i32, i32
  }
  func.func @transform_1(%arg0: i32) -> (i32, i32, i32) {
    %c0_i32 = arith.constant 0 : i32
    %c0_i32_0 = arith.constant 0 : i32
    %c0_i32_1 = arith.constant 0 : i32
    return %arg0, %c0_i32, %c0_i32_0 : i32, i32, i32
  }
  func.func @transform_2(%arg0: i32) -> (i32, i32) {
    %c0_i32 = arith.constant 0 : i32
    %c0_i32_0 = arith.constant 0 : i32
    return %arg0, %c0_i32 : i32, i32
  }
  func.func @transform_3(%arg0: i32) -> (i32, i32) {
    %c0_i32 = arith.constant 0 : i32
    %c0_i32_0 = arith.constant 0 : i32
    %c0_i32_1 = arith.constant 0 : i32
    return %c0_i32, %c0_i32_0 : i32, i32
  }
  func.func @transform_4(%arg0: i32) -> (i32, i32) {
    %c0_i32 = arith.constant 0 : i32
    %c0_i32_0 = arith.constant 0 : i32
    %c0_i32_1 = arith.constant 0 : i32
    return %c0_i32, %c0_i32_0 : i32, i32
  }
  func.func @transform_5(%arg0: i32) -> (i32, i32) {
    %c0_i32 = arith.constant 0 : i32
    %c0_i32_0 = arith.constant 0 : i32
    %c0_i32_1 = arith.constant 0 : i32
    return %c0_i32, %c0_i32_0 : i32, i32
  }
  func.func @transform_6(%arg0: i32) -> (i32, i32) {
    %c0_i32 = arith.constant 0 : i32
    %c0_i32_0 = arith.constant 0 : i32
    %c0_i32_1 = arith.constant 0 : i32
    return %c0_i32, %c0_i32_0 : i32, i32
  }
  func.func @transform_7(%arg0: i32) -> (i32, i32) {
    %c0_i32 = arith.constant 0 : i32
    %c0_i32_0 = arith.constant 0 : i32
    %c0_i32_1 = arith.constant 0 : i32
    return %c0_i32, %c0_i32_0 : i32, i32
  }
  func.func @transform_8(%arg0: i32) -> (i32, i32) {
    %c0_i32 = arith.constant 0 : i32
    %c0_i32_0 = arith.constant 0 : i32
    %c0_i32_1 = arith.constant 0 : i32
    return %c0_i32, %c0_i32_0 : i32, i32
  }
  func.func @transform_9(%arg0: i32) -> (i32, i32) {
    %c0_i32 = arith.constant 0 : i32
    %c0_i32_0 = arith.constant 0 : i32
    %c0_i32_1 = arith.constant 0 : i32
    return %c0_i32, %c0_i32_0 : i32, i32
  }
  func.func @transform_10(%arg0: i32) -> (i32, i32) {
    %c0_i32 = arith.constant 0 : i32
    %c0_i32_0 = arith.constant 0 : i32
    %c0_i32_1 = arith.constant 0 : i32
    return %c0_i32, %c0_i32_0 : i32, i32
  }
  func.func @transform_11(%arg0: i32) -> (i32, i32, i32) {
    %c0_i32 = arith.constant 0 : i32
    %c0_i32_0 = arith.constant 0 : i32
    %c0_i32_1 = arith.constant 0 : i32
    return %arg0, %c0_i32, %c0_i32_0 : i32, i32, i32
  }
}

</mosaic_0001>

<bundles_post_ra>
// kernel: tpu_custom_call.1
= control target key start
LH: loop header
LB: loop body
LE: loop exit
PB: predicated region body
PF: predicated region fallthrough
CT: control target
= control target key end

     0   :  { %s8489_s0 = inlined_call_operand.vmem [shape: f32[64,8,8], index: 0, kind: input, shape index: {}]   ;;  %s8490_s1 = inlined_call_operand.vmem [shape: f32[64,8,16], index: 1, kind: input, shape index: {}]   ;;  %s8491_s2 = inlined_call_operand.vmem [shape: f32[64,4], index: 2, kind: input, shape index: {}]   ;;  %s8492_s3 = inlined_call_operand.vmem [shape: f32[16,128], index: 3, kind: input, shape index: {}]   ;;  %s8493_s4 = inlined_call_operand.vmem [shape: f32[1,128], index: 4, kind: input, shape index: {}]   ;;  %s8494_s5 = inlined_call_operand.vmem [shape: f32[128,20], index: 5, kind: input, shape index: {}]   ;;  %s8495_s6 = inlined_call_operand.vmem [shape: f32[1,20], index: 6, kind: input, shape index: {}]   ;;  %s8496_s7 = inlined_call_operand.vmem [shape: f32[20,40], index: 7, kind: input, shape index: {}]   ;;  %s8497_s8 = inlined_call_operand.vmem [shape: f32[1,10], index: 8, kind: input, shape index: {}]   ;;  %s8498_s9 = inlined_call_operand.vmem [shape: f32[10,4], index: 9, kind: input, shape index: {}]   ;;  %s8499_s10 = inlined_call_operand.vmem [shape: f32[1,4], index: 10, kind: input, shape index: {}]   ;;  %s8500_s11 = inlined_call_operand.hbm [shape: f32[2,4,32], index: 11, kind: output, shape index: {}]  }
   0x1   :  { %8501 = sst [smem:[#allocation5_spill]] %s8489_s0 }
   0x2   :  { %16 = vsyncpa [#allocation3], 0 }
   0x3   :  { %18 = vsyncpa [#allocation3 + $0x1], 0  ;;  %s7607_s17 = smov 0   ;;  %s7609_s18 = smov 0  }
   0x4   :  { %s7611_s19 = smov 0   ;;  %s7613_s20 = smov 0  }
   0x5 LB: > { %s7628_s21 = sadd.s32 4294967295, %s7534_s20   ;;  %s6545_s22 = sadd.s32 4294967294, %s7534_s20   ;;  %s7534_s20 = sphi %s7613_s20, %s8508_s20   ;;  %s7530_s19 = sphi %s7611_s19, %s8507_s19   ;;  %s7526_s18 = sphi %s7609_s18, %s8506_s18   ;;  %s7522_s17 = sphi %s7607_s17, %s8505_s17  }
   0x6   : > { %s7632_s23 = sadd.s32 1, %s7534_s20   ;;  %s277_s24 = sadd.s32 1, %s7530_s19 }
   0x7   : > { %s274_s25 = ssub.s32 %s7534_s20, %s7632_s23  ;;  %p287_p0 = scmp.ne.s32.totalorder %s7530_s19, %s7526_s18 }
   0x8   : > { %p275_p1 = scmp.eq.s32.totalorder %s274_s25, 0  ;;  %p288_p2 = scmp.eq.s32.totalorder %s7628_s21, 1 }
   0x9   : > { %p293_p3 = scmp.ne.s32.totalorder %s7526_s18, %s7522_s17  ;;  %p294_p4 = scmp.eq.s32.totalorder %s6545_s22, 1 }
   0xa   : > { %s7643_s26 = scalar_select %p275_p1, %s7530_s19, %s277_s24  }
   0xb   : > { %p7645_p5 = por %p288_p2, %p287_p0  ;;  %p7649_p6 = por %p294_p4, %p293_p3 }
   0xc   : > { %p6548_p7 = scmp.ge.s32.totalorder %s7534_s20, 1  ;;  %p363_p8 = scmp.lt.s32.totalorder %s7534_s20, 3 }
   0xe   : > { %p364_p9 = pnand %p6548_p7, %p363_p8 }
   0xf   : > { %v495_v0 = vld [vmem:[%s8492_s3] sm:$0xff] (!%p364_p9)  ;;  %v496_v1 = vld [vmem:[%s8492_s3 + $0x8] sm:$0xff] (!%p364_p9)  ;;  %s6550_s14 = sshll.u32 (!%p364_p9), %s7628_s21, 5  ;;  %vm497_vm0 = vcmask (!%p364_p9), 130048   ;;  %v7536_v35 = vmov (!%p364_p9), 0.0   ;;  %vm7537_vm1 = vmmov (!%p364_p9), 0  }
  0x10   : > { %367 = sbr.rel (%p364_p9) target bundleno = 1711 (0x6af), region = 64  ;;  %v7367_v2 = vpack.c.bf16 (!%p364_p9), %v496_v1, %v495_v0  ;;  %p414_p10 = scmp.lt.s32.totalorder (!%p364_p9), %s6550_s14, 63  ;;  %6945 = vmatprep.subr.mxu1 (!%p364_p9), %v7536_v35  ;;  %6947 = vmatprep.mubr.msk.f32.mxu1 (!%p364_p9), %vm7537_vm1, %v7536_v35  ;;  %vm826_vm2 = vcmask (!%p364_p9), 64512   ;;  %vm6055_vm3 = vcmask (!%p364_p9), 1043456   ;;  %vm5715_vm4 = vcmask (!%p364_p9), 162816  }
  0x11   : > { %s8504_s0 = sld [smem:[#allocation5_spill]] (!%p364_p9)  ;;  %vm6012_vm5 = vcmask (!%p364_p9), 1041409   ;;  %vm6014_vm6 = vcmask (!%p364_p9), 1042434   ;;  %vm6016_vm7 = vcmask (!%p364_p9), 1043459   ;;  %vm6018_vm8 = vcmask (!%p364_p9), 1044484   ;;  %s7542_s25 = smov (!%p364_p9), 118  }
  0x12   : > { %7368 = vmatprep.subr.bf16.mxu0 (!%p364_p9), %v7367_v2  ;;  %vm6020_vm9 = vcmask (!%p364_p9), 1045509   ;;  %vm6022_vm10 = vcmask (!%p364_p9), 1046534   ;;  %vm6024_vm11 = vcmask (!%p364_p9), 1047559   ;;  %vm6325_vm12 = vcmask (!%p364_p9), 1041408   ;;  %s410_s29 = sand.u32 (!%p364_p9), 1, %s7526_s18   ;;  %s6667_s13 = sshll.u32 (!%p364_p9), %s7628_s21, 6 }
  0x13   : > { %7370 = vmatpush3.bf16.msra.mxu0 (!%p364_p9), %v7367_v2  ;;  %vm7544_vm13 = vmmov (!%p364_p9), 1   ;;  %vm6312_vm15 = vcmask (!%p364_p9), 80896   ;;  %s6549_s12 = sshll.u32 (!%p364_p9), %s410_s29, 2  ;;  %s8447_s22 = scalar_lea.hbm (!%p364_p9), %s8500_s11, %s6667_s13 }
  0x14   : > { %7030 = vmatprep.subr.mxu0 (!%p364_p9), %v7536_v35  ;;  %vm7408_vm14 = vmpackc.low (!%p364_p9), %vm6325_vm12, %vm7544_vm13 }
  0x17   : > { %s8510_s14 = smov (!%p414_p10, %s6550_s14), 63 }
  0x18   : > { %s6551_s15 = sshll.u32 %s8510_s14, 3  ;;  %s412_s14 = scalar_lea.vmem [#allocation2], %s6549_s12 }
  0x19   : > { %s7670_s24 = scalar_lea.vmem %s8490_s1, %s6551_s15  ;;  %s7747_s30 = scalar_lea.vmem %s8504_s0, %s6551_s15 }
  0x1a   : > { %v463_v3 = vld [vmem:[%s7670_s24] sm:$0xff]  ;;  %v464_v4 = vld [vmem:[%s7670_s24 + $0x8] sm:$0xff]  ;;  %v465_v5 = vld [vmem:[%s7670_s24 + $0x10] sm:$0xff]  ;;  %s6554_s15 = sshll.u32 %s7628_s21, 2  ;;  %s7546_s21 = smov [#allocation2]  }
  0x1b   : > { %6897 = vmatprep.mubr.msk.f32.mxu0 %vm497_vm0, %v463_v3  ;;  %v466_v6 = vld [vmem:[%s7670_s24 + $0x18] sm:$0xff]  ;;  %v467_v7 = vld [vmem:[%s7670_s24 + $0x20] sm:$0xff]  ;;  %v468_v8 = vld [vmem:[%s7670_s24 + $0x28] sm:$0xff]  ;;  %p426_p11 = scmp.lt.s32.totalorder %s6554_s15, 7  ;;  %s7476_s12 = sshll.u32 %s7546_s21, 4  ;;  %s7477_s12 = int_to_ptr.vmem [resolvable:$false] %s7476_s12 }
  0x1c   : > { %6898 = vmatmul.mubr.msk.f32.vlgmr.msra.gmra.mrb[0].mxu0 %vm497_vm0, %v464_v4  ;;  %v469_v9 = vld [vmem:[%s7670_s24 + $0x30] sm:$0xff]  ;;  %v470_v10 = vld [vmem:[%s7670_s24 + $0x38] sm:$0xff]  ;;  %v471_v11 = vld [vmem:[%s7670_s24 + $0x40] sm:$0xff]  ;;  %s7478_s0 = scalar_lea.vmem %s7477_s12, 128 }
  0x1d   : > { %6900 = vmatprep.mubr.msk.f32.mxu0 %vm497_vm0, %v465_v5  ;;  %v472_v12 = vld [vmem:[%s7670_s24 + $0x48] sm:$0xff]  ;;  %v473_v13 = vld [vmem:[%s7670_s24 + $0x50] sm:$0xff]  ;;  %v474_v14 = vld [vmem:[%s7670_s24 + $0x58] sm:$0xff]  ;;  %s8512_s15 = smov (!%p426_p11, %s6554_s15), 7 }
  0x1e   : > { %v475_v15 = vld [vmem:[%s7670_s24 + $0x60] sm:$0xff]  ;;  %v476_v16 = vld [vmem:[%s7670_s24 + $0x68] sm:$0xff]  ;;  %v477_v17 = vld [vmem:[%s7670_s24 + $0x70] sm:$0xff]  ;;  %s6555_s16 = sshll.u32 %s8512_s15, 3  ;;  %s7543_s15 = smov 108  }
  0x1f   : > { %v478_v18 = vld [vmem:[%s7670_s24 + $0x78] sm:$0xff]  ;;  %v479_v19 = vld [vmem:[%s7670_s24 + $0x80] sm:$0xff]  ;;  %v480_v20 = vld [vmem:[%s7670_s24 + $0x88] sm:$0xff] }
  0x20   : > { %6901 = vmatmul.mubr.msk.f32.gmra.mrb[2].mxu0 %vm497_vm0, %v466_v6  ;;  %v481_v21 = vld [vmem:[%s7670_s24 + $0x90] sm:$0xff]  ;;  %v482_v22 = vld [vmem:[%s7670_s24 + $0x98] sm:$0xff]  ;;  %v483_v23 = vld [vmem:[%s7670_s24 + $0xa0] sm:$0xff] }
  0x21   : > { %6903 = vmatprep.mubr.msk.f32.mxu0 %vm497_vm0, %v467_v7  ;;  %v484_v24 = vld [vmem:[%s7670_s24 + $0xa8] sm:$0xff]  ;;  %v485_v25 = vld [vmem:[%s7670_s24 + $0xb0] sm:$0xff]  ;;  %v486_v26 = vld [vmem:[%s7670_s24 + $0xb8] sm:$0xff] }
  0x22   : > { %v487_v27 = vld [vmem:[%s7670_s24 + $0xc0] sm:$0xff]  ;;  %v488_v28 = vld [vmem:[%s7670_s24 + $0xc8] sm:$0xff]  ;;  %v489_v29 = vld [vmem:[%s7670_s24 + $0xd0] sm:$0xff] }
  0x23   : > { %v490_v30 = vld [vmem:[%s7670_s24 + $0xd8] sm:$0xff]  ;;  %v491_v31 = vld [vmem:[%s7670_s24 + $0xe0] sm:$0xff]  ;;  %v492_v32 = vld [vmem:[%s7670_s24 + $0xe8] sm:$0xff] }
  0x24   : > { %6904 = vmatmul.mubr.msk.f32.gmra.mrb[4].mxu0 %vm497_vm0, %v468_v8  ;;  %v493_v33 = vld [vmem:[%s7670_s24 + $0xf0] sm:$0xff]  ;;  %v494_v34 = vld [vmem:[%s7670_s24 + $0xf8] sm:$0xff]  ;;  %v7750_v37 = vld [vmem:[%s7747_s30] sm:$0xff]  ;;  %s8285_s24 = scalar_lea.vmem %s8491_s2, %s6555_s16  ;;  %s7545_s16 = smov 98  }
  0x25   : > { %6906 = vmatprep.mubr.msk.f32.mxu0 %vm497_vm0, %v469_v9  ;;  %v7758_v40 = vld [vmem:[%s7747_s30 + $0x8] sm:$0xff]  ;;  %v7766_v42 = vld [vmem:[%s7747_s30 + $0x10] sm:$0xff]  ;;  %v7774_v45 = vld [vmem:[%s7747_s30 + $0x18] sm:$0xff] }
  0x26   : > { %v7782_v48 = vld [vmem:[%s7747_s30 + $0x20] sm:$0xff]  ;;  %v7790_v51 = vld [vmem:[%s7747_s30 + $0x28] sm:$0xff]  ;;  %v7798_v54 = vld [vmem:[%s7747_s30 + $0x30] sm:$0xff] }
  0x27   : > { %v7808_v57 = vld [vmem:[%s7747_s30 + $0x38] sm:$0xff]  ;;  %v7818_v60 = vld [vmem:[%s7747_s30 + $0x88] sm:$0xff]  ;;  %v7823_v61 = vld [vmem:[%s7747_s30 + $0x40] sm:$0xff] }
  0x28   : > { %6907 = vmatmul.mubr.msk.f32.gmra.mrb[6].mxu0 %vm497_vm0, %v470_v10  ;;  %v7836_v0 = vld [vmem:[%s7747_s30 + $0x98] sm:$0xff]  ;;  %v7841_v1 = vld [vmem:[%s7747_s30 + $0x48] sm:$0xff]  ;;  %v7859_v5 = vld [vmem:[%s7747_s30 + $0x50] sm:$0xff] }
  0x29   : > { %6909 = vmatprep.mubr.msk.f32.mxu0 %vm497_vm0, %v471_v11  ;;  %v7854_v4 = vld [vmem:[%s7747_s30 + $0xa8] sm:$0xff]  ;;  %v7872_v8 = vld [vmem:[%s7747_s30 + $0xb8] sm:$0xff] }
  0x2a   : > { %v7877_v9 = vld [vmem:[%s7747_s30 + $0x58] sm:$0xff] }
  0x2c   : > { %6910 = vmatmul.mubr.msk.f32.gmra.mrb[8].mxu0 %vm497_vm0, %v472_v12  ;;  %v7890_v12 = vld [vmem:[%s7747_s30 + $0xc8] sm:$0xff] }
  0x2d   : > { %6912 = vmatprep.mubr.msk.f32.mxu0 %vm497_vm0, %v473_v13  ;;  %v7895_v13 = vld [vmem:[%s7747_s30 + $0x60] sm:$0xff] }
  0x30   : > { %6913 = vmatmul.mubr.msk.f32.gmra.mrb[10].mxu0 %vm497_vm0, %v474_v14 }
  0x31   : > { %6915 = vmatprep.mubr.msk.f32.mxu0 %vm497_vm0, %v475_v15 }
  0x34   : > { %6916 = vmatmul.mubr.msk.f32.gmra.mrb[12].mxu0 %vm497_vm0, %v476_v16  ;;  %v7906_v16 = vld [vmem:[%s7747_s30 + $0xd8] sm:$0xff] }
  0x35   : > { %6918 = vmatprep.mubr.msk.f32.mxu0 %vm497_vm0, %v477_v17  ;;  %v7912_v17 = vld [vmem:[%s7747_s30 + $0x68] sm:$0xff] }
  0x38   : > { %6919 = vmatmul.mubr.msk.f32.gmra.mrb[14].mxu0 %vm497_vm0, %v478_v18 }
  0x39   : > { %6921 = vmatprep.mubr.msk.f32.mxu0 %vm497_vm0, %v479_v19 }
  0x3c   : > { %6922 = vmatmul.mubr.msk.f32.gmra.mrb[16].mxu0 %vm497_vm0, %v480_v20  ;;  %v7923_v20 = vld [vmem:[%s7747_s30 + $0xe8] sm:$0xff] }
  0x3d   : > { %6924 = vmatprep.mubr.msk.f32.mxu0 %vm497_vm0, %v481_v21  ;;  %v7929_v21 = vld [vmem:[%s7747_s30 + $0x70] sm:$0xff] }
  0x40   : > { %6925 = vmatmul.mubr.msk.f32.gmra.mrb[18].mxu0 %vm497_vm0, %v482_v22 }
  0x41   : > { %6927 = vmatprep.mubr.msk.f32.mxu0 %vm497_vm0, %v483_v23 }
  0x44   : > { %6928 = vmatmul.mubr.msk.f32.gmra.mrb[20].mxu0 %vm497_vm0, %v484_v24  ;;  %v7940_v24 = vld [vmem:[%s7747_s30 + $0xf8] sm:$0xff] }
  0x45   : > { %6930 = vmatprep.mubr.msk.f32.mxu0 %vm497_vm0, %v485_v25  ;;  %v7946_v25 = vld [vmem:[%s7747_s30 + $0x78] sm:$0xff] }
  0x48   : > { %6931 = vmatmul.mubr.msk.f32.gmra.mrb[22].mxu0 %vm497_vm0, %v486_v26 }
  0x49   : > { %6933 = vmatprep.mubr.msk.f32.mxu0 %vm497_vm0, %v487_v27 }
  0x4c   : > { %6934 = vmatmul.mubr.msk.f32.gmra.mrb[24].mxu0 %vm497_vm0, %v488_v28  ;;  %v7960_v28 = vld [vmem:[%s7747_s30 + $0x80] sm:$0xff] }
  0x4d   : > { %6936 = vmatprep.mubr.msk.f32.mxu0 %vm497_vm0, %v489_v29  ;;  %v7969_v29 = vld [vmem:[%s7747_s30 + $0x90] sm:$0xff] }
  0x50   : > { %6937 = vmatmul.mubr.msk.f32.gmra.mrb[26].mxu0 %vm497_vm0, %v490_v30  ;;  %v7978_v30 = vld [vmem:[%s7747_s30 + $0xa0] sm:$0xff] }
  0x51   : > { %6939 = vmatprep.mubr.msk.f32.mxu0 %vm497_vm0, %v491_v31  ;;  %v7987_v31 = vld [vmem:[%s7747_s30 + $0xb0] sm:$0xff] }
  0x54   : > { %6940 = vmatmul.mubr.msk.f32.gmra.mrb[28].mxu0 %vm497_vm0, %v492_v32  ;;  %v7995_v32 = vld [vmem:[%s7747_s30 + $0xc0] sm:$0xff] }
  0x55   : > { %6942 = vmatprep.mubr.msk.f32.mxu0 %vm497_vm0, %v493_v33  ;;  %v8003_v33 = vld [vmem:[%s7747_s30 + $0xd0] sm:$0xff] }
  0x58   : > { %6943 = vmatmul.mubr.msk.f32.gmra.mrb[30].mxu0 %vm497_vm0, %v494_v34  ;;  %v3195_v34 = vld [vmem:[%s8494_s5] sm:$0xff]  ;;  %vm6446_vm0 = vcmask 257024  }
  0x59   : > { %7032 = vmatprep.mubr.msk.f32.mxu0 %vm7537_vm1, %v7536_v35 }
  0xef   : > { %v6899_v36 = vpop.f32.mrb[0].mxu0 }
  0xf0   : > { %v660_v38 = vpop.f32.mrb[1].mxu0 }
  0xf1   : > { %6946 = vmatpush3.msra.mxu1 %v660_v38  ;;  %v8017_v38 = vld [vmem:[%s7747_s30 + $0xe0] sm:$0xff] }
  0xf2   : > { %6948 = vmatmul.mubr.msk.f32.vlgmr.msra.gmra.mrb[0].mxu1 %vm826_vm2, %v7750_v37  ;;  %6950 = vmatprep.subr.mxu1 %v7536_v35 }
  0xf3   : > { %6951 = vmatpush3.msra.mxu1 %v6899_v36  ;;  %6952 = vmatprep.mubr.msk.f32.mxu1 %vm7537_vm1, %v7536_v35  ;;  %v6902_v39 = vpop.f32.mrb[2].mxu0  ;;  %v3196_v36 = vld [vmem:[%s8494_s5 + $0x8] sm:$0xff] }
  0xf4   : > { %v670_v41 = vpop.f32.mrb[3].mxu0  ;;  %6955 = vmatprep.subr.mxu1 %v7536_v35 }
  0xf6   : > { %6953 = vmatmul.mubr.msk.f32.vlgmr.msra.gmra.mrb[2].mxu1 %vm826_vm2, %v7758_v40 }
  0xf7   : > { %6956 = vmatpush3.msra.mxu1 %v670_v41  ;;  %6957 = vmatprep.mubr.msk.f32.mxu1 %vm7537_vm1, %v7536_v35  ;;  %v6905_v43 = vpop.f32.mrb[4].mxu0  ;;  %v3197_v41 = vld [vmem:[%s8494_s5 + $0x10] sm:$0xff] }
  0xf8   : > { %6960 = vmatprep.subr.mxu1 %v7536_v35  ;;  %v680_v44 = vpop.f32.mrb[5].mxu0 }
  0xfa   : > { %6958 = vmatmul.mubr.msk.f32.vlgmr.msra.gmra.mrb[4].mxu1 %vm826_vm2, %v7766_v42 }
  0xfb   : > { %6961 = vmatpush3.msra.mxu1 %v6902_v39  ;;  %6962 = vmatprep.mubr.msk.f32.mxu1 %vm7537_vm1, %v7536_v35  ;;  %v6908_v46 = vpop.f32.mrb[6].mxu0  ;;  %v7371_v39 = vpack.c.bf16 %v3196_v36, %v3195_v34 }
  0xfc   : > { %6965 = vmatprep.subr.mxu1 %v7536_v35  ;;  %v690_v47 = vpop.f32.mrb[7].mxu0 }
  0xfe   : > { %6963 = vmatmul.mubr.msk.f32.vlgmr.msra.gmra.mrb[6].mxu1 %vm826_vm2, %v7774_v45 }
  0xff   : > { %6966 = vmatpush3.msra.mxu1 %v680_v44  ;;  %6967 = vmatprep.mubr.msk.f32.mxu1 %vm7537_vm1, %v7536_v35  ;;  %v6911_v49 = vpop.f32.mrb[8].mxu0  ;;  %v8031_v44 = vld [vmem:[%s7747_s30 + $0xf0] sm:$0xff] }
 0x100   : > { %6970 = vmatprep.subr.mxu1 %v7536_v35  ;;  %v700_v50 = vpop.f32.mrb[9].mxu0 }
 0x102   : > { %6968 = vmatmul.mubr.msk.f32.vlgmr.msra.gmra.mrb[8].mxu1 %vm826_vm2, %v7782_v48 }
 0x103   : > { %6971 = vmatpush3.msra.mxu1 %v6905_v43  ;;  %6972 = vmatprep.mubr.msk.f32.mxu1 %vm7537_vm1, %v7536_v35  ;;  %v6914_v52 = vpop.f32.mrb[10].mxu0  ;;  %v3198_v43 = vld [vmem:[%s8494_s5 + $0x18] sm:$0xff] }
 0x104   : > { %6975 = vmatprep.subr.mxu1 %v7536_v35  ;;  %v710_v53 = vpop.f32.mrb[11].mxu0 }
 0x106   : > { %6973 = vmatmul.mubr.msk.f32.vlgmr.msra.gmra.mrb[10].mxu1 %vm826_vm2, %v7790_v51 }
 0x107   : > { %6976 = vmatpush3.msra.mxu1 %v690_v47  ;;  %6977 = vmatprep.mubr.msk.f32.mxu1 %vm7537_vm1, %v7536_v35  ;;  %v7800_v55 = vpop.f32.mrb[12].mxu0  ;;  %v3199_v47 = vld [vmem:[%s8494_s5 + $0x20] sm:$0xff] }
 0x108   : > { %6980 = vmatprep.subr.mxu1 %v7536_v35  ;;  %v720_v56 = vpop.f32.mrb[13].mxu0 }
 0x10a   : > { %6978 = vmatmul.mubr.msk.f32.vlgmr.msra.gmra.mrb[12].mxu1 %vm826_vm2, %v7798_v54 }
 0x10b   : > { %6981 = vmatpush3.msra.mxu1 %v6908_v46  ;;  %6982 = vmatprep.mubr.msk.f32.mxu1 %vm7537_vm1, %v7536_v35  ;;  %v7810_v58 = vpop.f32.mrb[14].mxu0  ;;  %v7375_v46 = vpack.c.bf16 %v3198_v43, %v3197_v41 }
 0x10c   : > { %6985 = vmatprep.subr.mxu1 %v7536_v35  ;;  %v7813_v59 = vpop.f32.mrb[15].mxu0 }
 0x10e   : > { %6983 = vmatmul.mubr.msk.f32.vlgmr.msra.gmra.mrb[14].mxu1 %vm826_vm2, %v7808_v57 }
 0x10f   : > { %6986 = vmatpush3.msra.mxu1 %v700_v50  ;;  %6987 = vmatprep.mubr.msk.f32.mxu1 %vm7537_vm1, %v7536_v35  ;;  %v6923_v62 = vpop.f32.mrb[16].mxu0 }
 0x110   : > { %6990 = vmatprep.subr.mxu1 %v7536_v35  ;;  %v7826_v63 = vpop.f32.mrb[17].mxu0  ;;  %7031 = vmatpush3.msra.mxu0 %v6923_v62  ;;  %v3205_v62 = vld [vmem:[%s8494_s5 + $0x50] sm:$0xff] }
 0x111   : > { %7033 = vmatmul.mubr.msk.f32.vlgmr.msra.gmra.mrb[32].mxu0 %vm826_vm2, %v7818_v60  ;;  %7040 = vmatprep.subr.mxu0 %v7536_v35 }
 0x112   : > { %6988 = vmatmul.mubr.msk.f32.vlgmr.msra.gmra.mrb[16].mxu1 %vm826_vm2, %v7823_v61  ;;  %7042 = vmatprep.mubr.msk.f32.mxu0 %vm7537_vm1, %v7536_v35 }
 0x113   : > { %6991 = vmatpush3.msra.mxu1 %v6911_v49  ;;  %6992 = vmatprep.mubr.msk.f32.mxu1 %vm7537_vm1, %v7536_v35  ;;  %v6926_v2 = vpop.f32.mrb[18].mxu0  ;;  %v3200_v49 = vld [vmem:[%s8494_s5 + $0x28] sm:$0xff] }
 0x114   : > { %6995 = vmatprep.subr.mxu1 %v7536_v35  ;;  %v7844_v3 = vpop.f32.mrb[19].mxu0  ;;  %7041 = vmatpush3.msra.mxu0 %v6926_v2  ;;  %v7379_v50 = vpack.c.bf16 %v3200_v49, %v3199_v47 }
 0x115   : > { %7043 = vmatmul.mubr.msk.f32.vlgmr.msra.gmra.mrb[34].mxu0 %vm826_vm2, %v7836_v0  ;;  %7050 = vmatprep.subr.mxu0 %v7536_v35 }
 0x116   : > { %6993 = vmatmul.mubr.msk.f32.vlgmr.msra.gmra.mrb[18].mxu1 %vm826_vm2, %v7841_v1  ;;  %7052 = vmatprep.mubr.msk.f32.mxu0 %vm7537_vm1, %v7536_v35 }
 0x117   : > { %6996 = vmatpush3.msra.mxu1 %v710_v53  ;;  %6997 = vmatprep.mubr.msk.f32.mxu1 %vm7537_vm1, %v7536_v35  ;;  %v6929_v6 = vpop.f32.mrb[20].mxu0  ;;  %v3202_v53 = vld [vmem:[%s8494_s5 + $0x38] sm:$0xff] }
 0x118   : > { %7000 = vmatprep.subr.mxu1 %v7536_v35  ;;  %v7862_v7 = vpop.f32.mrb[21].mxu0  ;;  %7051 = vmatpush3.msra.mxu0 %v6929_v6  ;;  %v3208_v6 = vld [vmem:[%s8494_s5 + $0x68] sm:$0xff] }
 0x119   : > { %7053 = vmatmul.mubr.msk.f32.vlgmr.msra.gmra.mrb[36].mxu0 %vm826_vm2, %v7854_v4  ;;  %7060 = vmatprep.subr.mxu0 %v7536_v35 }
 0x11a   : > { %6998 = vmatmul.mubr.msk.f32.vlgmr.msra.gmra.mrb[20].mxu1 %vm826_vm2, %v7859_v5  ;;  %7062 = vmatprep.mubr.msk.f32.mxu0 %vm7537_vm1, %v7536_v35 }
 0x11b   : > { %7001 = vmatpush3.msra.mxu1 %v6914_v52  ;;  %7002 = vmatprep.mubr.msk.f32.mxu1 %vm7537_vm1, %v7536_v35  ;;  %v6932_v10 = vpop.f32.mrb[22].mxu0  ;;  %v3201_v52 = vld [vmem:[%s8494_s5 + $0x30] sm:$0xff] }
 0x11c   : > { %7005 = vmatprep.subr.mxu1 %v7536_v35  ;;  %v7880_v11 = vpop.f32.mrb[23].mxu0  ;;  %7061 = vmatpush3.msra.mxu0 %v6932_v10  ;;  %v3209_v10 = vld [vmem:[%s8494_s5 + $0x70] sm:$0xff] }
 0x11d   : > { %7063 = vmatmul.mubr.msk.f32.vlgmr.msra.gmra.mrb[38].mxu0 %vm826_vm2, %v7872_v8  ;;  %7070 = vmatprep.subr.mxu0 %v7536_v35 }
 0x11e   : > { %7003 = vmatmul.mubr.msk.f32.vlgmr.msra.gmra.mrb[22].mxu1 %vm826_vm2, %v7877_v9  ;;  %7072 = vmatprep.mubr.msk.f32.mxu0 %vm7537_vm1, %v7536_v35 }
 0x11f   : > { %7006 = vmatpush3.msra.mxu1 %v720_v56  ;;  %7007 = vmatprep.mubr.msk.f32.mxu1 %vm7537_vm1, %v7536_v35  ;;  %v6935_v14 = vpop.f32.mrb[24].mxu0  ;;  %v3203_v56 = vld [vmem:[%s8494_s5 + $0x40] sm:$0xff] }
 0x120   : > { %7010 = vmatprep.subr.mxu1 %v7536_v35  ;;  %v780_v15 = vpop.f32.mrb[25].mxu0  ;;  %7071 = vmatpush3.msra.mxu0 %v6935_v14 }
 0x121   : > { %7073 = vmatmul.mubr.msk.f32.vlgmr.msra.gmra.mrb[40].mxu0 %vm826_vm2, %v7890_v12  ;;  %7080 = vmatprep.subr.mxu0 %v7536_v35 }
 0x122   : > { %7008 = vmatmul.mubr.msk.f32.vlgmr.msra.gmra.mrb[24].mxu1 %vm826_vm2, %v7895_v13  ;;  %7082 = vmatprep.mubr.msk.f32.mxu0 %vm7537_vm1, %v7536_v35 }
 0x123   : > { %7011 = vmatpush3.msra.mxu1 %v7800_v55  ;;  %7012 = vmatprep.mubr.msk.f32.mxu1 %vm7537_vm1, %v7536_v35  ;;  %v6938_v18 = vpop.f32.mrb[26].mxu0  ;;  %v7383_v55 = vpack.c.bf16 %v3202_v53, %v3201_v52 }
 0x124   : > { %7015 = vmatprep.subr.mxu1 %v7536_v35  ;;  %v790_v19 = vpop.f32.mrb[27].mxu0  ;;  %7081 = vmatpush3.msra.mxu0 %v6938_v18 }
 0x125   : > { %7083 = vmatmul.mubr.msk.f32.vlgmr.msra.gmra.mrb[42].mxu0 %vm826_vm2, %v7906_v16  ;;  %7090 = vmatprep.subr.mxu0 %v7536_v35 }
 0x126   : > { %7013 = vmatmul.mubr.msk.f32.vlgmr.msra.gmra.mrb[26].mxu1 %vm826_vm2, %v7912_v17  ;;  %7092 = vmatprep.mubr.msk.f32.mxu0 %vm7537_vm1, %v7536_v35 }
 0x127   : > { %7016 = vmatpush3.msra.mxu1 %v7813_v59  ;;  %7017 = vmatprep.mubr.msk.f32.mxu1 %vm7537_vm1, %v7536_v35  ;;  %v6941_v22 = vpop.f32.mrb[28].mxu0 }
 0x128   : > { %7020 = vmatprep.subr.mxu1 %v7536_v35  ;;  %v800_v23 = vpop.f32.mrb[29].mxu0  ;;  %7091 = vmatpush3.msra.mxu0 %v6941_v22 }
 0x129   : > { %7093 = vmatmul.mubr.msk.f32.vlgmr.msra.gmra.mrb[44].mxu0 %vm826_vm2, %v7923_v20  ;;  %7100 = vmatprep.subr.mxu0 %v7536_v35 }
 0x12a   : > { %7018 = vmatmul.mubr.msk.f32.vlgmr.msra.gmra.mrb[28].mxu1 %vm826_vm2, %v7929_v21  ;;  %7102 = vmatprep.mubr.msk.f32.mxu0 %vm7537_vm1, %v7536_v35 }
 0x12b   : > { %7021 = vmatpush3.msra.mxu1 %v7810_v58  ;;  %7022 = vmatprep.mubr.msk.f32.mxu1 %vm7537_vm1, %v7536_v35  ;;  %v6944_v26 = vpop.f32.mrb[30].mxu0  ;;  %v3204_v58 = vld [vmem:[%s8494_s5 + $0x48] sm:$0xff] }
 0x12c   : > { %7025 = vmatprep.subr.mxu1 %v7536_v35  ;;  %v810_v27 = vpop.f32.mrb[31].mxu0  ;;  %7101 = vmatpush3.msra.mxu0 %v6944_v26  ;;  %v7387_v59 = vpack.c.bf16 %v3204_v58, %v3203_v56 }
 0x12d   : > { %7103 = vmatmul.mubr.msk.f32.vlgmr.msra.gmra.mrb[46].mxu0 %vm826_vm2, %v7940_v24  ;;  %7185 = vmatprep.subr.mxu0 %v7536_v35 }
 0x12e   : > { %7023 = vmatmul.mubr.msk.f32.vlgmr.msra.gmra.mrb[30].mxu1 %vm826_vm2, %v7946_v25  ;;  %7187 = vmatprep.mubr.msk.f32.mxu0 %vm7537_vm1, %v7536_v35 }
 0x12f   : > { %7026 = vmatpush3.msra.mxu1 %v7826_v63  ;;  %7027 = vmatprep.mubr.msk.f32.mxu1 %vm7537_vm1, %v7536_v35  ;;  %v3206_v63 = vld [vmem:[%s8494_s5 + $0x58] sm:$0xff] }
 0x130   : > { %7035 = vmatprep.subr.mxu1 %v7536_v35  ;;  %v7391_v2 = vpack.c.bf16 %v3206_v63, %v3205_v62 }
 0x132   : > { %7028 = vmatmul.mubr.msk.f32.vlgmr.msra.gmra.mrb[32].mxu1 %vm826_vm2, %v7960_v28 }
 0x133   : > { %7036 = vmatpush3.msra.mxu1 %v7844_v3  ;;  %7037 = vmatprep.mubr.msk.f32.mxu1 %vm7537_vm1, %v7536_v35  ;;  %v3207_v3 = vld [vmem:[%s8494_s5 + $0x60] sm:$0xff] }
 0x134   : > { %7045 = vmatprep.subr.mxu1 %v7536_v35 }
 0x136   : > { %7038 = vmatmul.mubr.msk.f32.vlgmr.msra.gmra.mrb[34].mxu1 %vm826_vm2, %v7969_v29 }
 0x137   : > { %7046 = vmatpush3.msra.mxu1 %v7862_v7  ;;  %7047 = vmatprep.mubr.msk.f32.mxu1 %vm7537_vm1, %v7536_v35  ;;  %v7395_v7 = vpack.c.bf16 %v3208_v6, %v3207_v3 }
 0x138   : > { %7055 = vmatprep.subr.mxu1 %v7536_v35 }
 0x13a   : > { %7048 = vmatmul.mubr.msk.f32.vlgmr.msra.gmra.mrb[36].mxu1 %vm826_vm2, %v7978_v30 }
 0x13b   : > { %7056 = vmatpush3.msra.mxu1 %v7880_v11  ;;  %7057 = vmatprep.mubr.msk.f32.mxu1 %vm7537_vm1, %v7536_v35  ;;  %v3210_v11 = vld [vmem:[%s8494_s5 + $0x78] sm:$0xff] }
 0x13c   : > { %7065 = vmatprep.subr.mxu1 %v7536_v35  ;;  %v7399_v14 = vpack.c.bf16 %v3210_v11, %v3209_v10 }
 0x13e   : > { %7058 = vmatmul.mubr.msk.f32.vlgmr.msra.gmra.mrb[38].mxu1 %vm826_vm2, %v7987_v31 }
 0x13f   : > { %7066 = vmatpush3.msra.mxu1 %v780_v15  ;;  %7067 = vmatprep.mubr.msk.f32.mxu1 %vm7537_vm1, %v7536_v35  ;;  %v8075_v15 = vld [vmem:[%s8493_s4] ss:$0 sm:$0xff] }
 0x140   : > { %7075 = vmatprep.subr.mxu1 %v7536_v35 }
 0x142   : > { %7068 = vmatmul.mubr.msk.f32.vlgmr.msra.gmra.mrb[40].mxu1 %vm826_vm2, %v7995_v32 }
 0x143   : > { %7076 = vmatpush3.msra.mxu1 %v790_v19  ;;  %7077 = vmatprep.mubr.msk.f32.mxu1 %vm7537_vm1, %v7536_v35 }
 0x144   : > { %7085 = vmatprep.subr.mxu1 %v7536_v35 }
 0x146   : > { %7078 = vmatmul.mubr.msk.f32.vlgmr.msra.gmra.mrb[42].mxu1 %vm826_vm2, %v8003_v33 }
 0x147   : > { %7086 = vmatpush3.msra.mxu1 %v800_v23  ;;  %7087 = vmatprep.mubr.msk.f32.mxu1 %vm7537_vm1, %v7536_v35 }
 0x148   : > { %7095 = vmatprep.subr.mxu1 %v7536_v35 }
 0x14a   : > { %7088 = vmatmul.mubr.msk.f32.vlgmr.msra.gmra.mrb[44].mxu1 %vm826_vm2, %v8017_v38 }
 0x14b   : > { %7096 = vmatpush3.msra.mxu1 %v810_v27  ;;  %7097 = vmatprep.mubr.msk.f32.mxu1 %vm7537_vm1, %v7536_v35 }
 0x14c   : > { %7372 = vmatprep.subr.bf16.mxu1 %v7371_v39 }
 0x14e   : > { %7098 = vmatmul.mubr.msk.f32.vlgmr.msra.gmra.mrb[46].mxu1 %vm826_vm2, %v8031_v44 }
 0x14f   : > { %7374 = vmatpush3.bf16.msra.mxu1 %v7371_v39 }
 0x150   : > { %7376 = vmatprep.subr.bf16.mxu1 %v7375_v46 }
 0x153   : > { %7378 = vmatpush3.bf16.msra.mxu1 %v7375_v46 }
 0x154   : > { %7380 = vmatprep.subr.bf16.mxu1 %v7379_v50 }
 0x157   : > { %7382 = vmatpush3.bf16.msra.mxu1 %v7379_v50 }
 0x158   : > { %7384 = vmatprep.subr.bf16.mxu1 %v7383_v55 }
 0x15b   : > { %7386 = vmatpush3.bf16.msra.mxu1 %v7383_v55 }
 0x15c   : > { %7388 = vmatprep.subr.bf16.mxu1 %v7387_v59 }
 0x15f   : > { %7390 = vmatpush3.bf16.msra.mxu1 %v7387_v59 }
 0x160   : > { %7392 = vmatprep.subr.bf16.mxu1 %v7391_v2 }
 0x163   : > { %7394 = vmatpush3.bf16.msra.mxu1 %v7391_v2 }
 0x164   : > { %7396 = vmatprep.subr.bf16.mxu1 %v7395_v7 }
 0x167   : > { %7398 = vmatpush3.bf16.msra.mxu1 %v7395_v7 }
 0x168   : > { %7400 = vmatprep.subr.bf16.mxu1 %v7399_v14 }
 0x16b   : > { %7402 = vmatpush3.bf16.msra.mxu1 %v7399_v14 }
 0x16c   : > { %7300 = vmatprep.subr.mxu1 %v7536_v35 }
 0x1c5   : > { %v896_v18 = vpop.f32.mrb[0].mxu1 }
 0x1c6   : > { %v897_v19 = vadd.f32 %v8075_v15, %v896_v18  ;;  %v6949_v22 = vpop.f32.mrb[1].mxu1 }
 0x1c8   : > { %v3163_v23 = vmax.f32 %v897_v19, 0.0 }
 0x1c9   : > { %v969_v26 = vpop.f32.mrb[2].mxu1 }
 0x1ca   : > { %v970_v27 = vadd.f32 %v8075_v15, %v969_v26  ;;  %v6954_v34 = vpop.f32.mrb[3].mxu1  ;;  %7137 = vmatprep.mubr.f32.mxu1 %v3163_v23 }
 0x1cc   : > { %v3164_v36 = vmax.f32 %v970_v27, 0.0 }
 0x1cd   : > { %v1042_v39 = vpop.f32.mrb[4].mxu1 }
 0x1ce   : > { %v1043_v41 = vadd.f32 %v8075_v15, %v1042_v39  ;;  %v6959_v43 = vpop.f32.mrb[5].mxu1  ;;  %7138 = vmatmul.mubr.f32.vlgmr.msra.gmra.mrb[48].mxu1 %v3164_v36 }
 0x1d0   : > { %v3165_v46 = vmax.f32 %v1043_v41, 0.0 }
 0x1d1   : > { %v1115_v47 = vpop.f32.mrb[6].mxu1 }
 0x1d2   : > { %v1116_v49 = vadd.f32 %v8075_v15, %v1115_v47  ;;  %v6964_v50 = vpop.f32.mrb[7].mxu1  ;;  %7140 = vmatprep.mubr.f32.mxu1 %v3165_v46 }
 0x1d4   : > { %v3166_v52 = vmax.f32 %v1116_v49, 0.0 }
 0x1d5   : > { %v1188_v53 = vpop.f32.mrb[8].mxu1 }
 0x1d6   : > { %v1189_v55 = vadd.f32 %v8075_v15, %v1188_v53  ;;  %v6969_v56 = vpop.f32.mrb[9].mxu1  ;;  %7141 = vmatmul.mubr.f32.gmra.mrb[50].mxu1 %v3166_v52 }
 0x1d8   : > { %v3167_v58 = vmax.f32 %v1189_v55, 0.0 }
 0x1d9   : > { %v1261_v59 = vpop.f32.mrb[10].mxu1 }
 0x1da   : > { %v1262_v62 = vadd.f32 %v8075_v15, %v1261_v59  ;;  %v6974_v63 = vpop.f32.mrb[11].mxu1  ;;  %7143 = vmatprep.mubr.f32.mxu1 %v3167_v58 }
 0x1dc   : > { %v3168_v2 = vmax.f32 %v1262_v62, 0.0 }
 0x1dd   : > { %v1334_v3 = vpop.f32.mrb[12].mxu1 }
 0x1de   : > { %v1335_v6 = vadd.f32 %v8075_v15, %v1334_v3  ;;  %v6979_v7 = vpop.f32.mrb[13].mxu1  ;;  %7144 = vmatmul.mubr.f32.gmra.mrb[52].mxu1 %v3168_v2 }
 0x1e0   : > { %v3169_v10 = vmax.f32 %v1335_v6, 0.0 }
 0x1e1   : > { %v1407_v11 = vpop.f32.mrb[14].mxu1 }
 0x1e2   : > { %v1408_v14 = vadd.f32 %v8075_v15, %v1407_v11  ;;  %v6984_v18 = vpop.f32.mrb[15].mxu1  ;;  %7146 = vmatprep.mubr.f32.mxu1 %v3169_v10 }
 0x1e4   : > { %v3170_v19 = vmax.f32 %v1408_v14, 0.0  ;;  %v2137_v22 = vpop.f32.mrb[32].mxu0 }
 0x1e5   : > { %v1480_v23 = vpop.f32.mrb[16].mxu1  ;;  %v7034_v26 = vpop.f32.mrb[33].mxu0 }
 0x1e6   : > { %v1481_v27 = vadd.f32 %v8075_v15, %v1480_v23  ;;  %v6989_v34 = vpop.f32.mrb[17].mxu1  ;;  %7147 = vmatmul.mubr.f32.gmra.mrb[54].mxu1 %v3170_v19 }
 0x1e8   : > { %v3171_v36 = vmax.f32 %v1481_v27, 0.0  ;;  %v2283_v39 = vpop.f32.mrb[34].mxu0 }
 0x1e9   : > { %v1553_v41 = vpop.f32.mrb[18].mxu1  ;;  %v7044_v43 = vpop.f32.mrb[35].mxu0 }
 0x1ea   : > { %v1554_v46 = vadd.f32 %v8075_v15, %v1553_v41  ;;  %v6994_v47 = vpop.f32.mrb[19].mxu1  ;;  %7149 = vmatprep.mubr.f32.mxu1 %v3171_v36 }
 0x1ec   : > { %v3172_v49 = vmax.f32 %v1554_v46, 0.0  ;;  %v2429_v50 = vpop.f32.mrb[36].mxu0 }
 0x1ed   : > { %v1626_v52 = vpop.f32.mrb[20].mxu1  ;;  %v7054_v53 = vpop.f32.mrb[37].mxu0 }
 0x1ee   : > { %v1627_v55 = vadd.f32 %v8075_v15, %v1626_v52  ;;  %v6999_v56 = vpop.f32.mrb[21].mxu1  ;;  %7150 = vmatmul.mubr.f32.gmra.mrb[56].mxu1 %v3172_v49 }
 0x1f0   : > { %v3173_v58 = vmax.f32 %v1627_v55, 0.0  ;;  %v2575_v59 = vpop.f32.mrb[38].mxu0 }
 0x1f1   : > { %v1699_v62 = vpop.f32.mrb[22].mxu1  ;;  %v7064_v63 = vpop.f32.mrb[39].mxu0 }
 0x1f2   : > { %v1700_v2 = vadd.f32 %v8075_v15, %v1699_v62  ;;  %v7004_v3 = vpop.f32.mrb[23].mxu1  ;;  %7152 = vmatprep.mubr.f32.mxu1 %v3173_v58 }
 0x1f4   : > { %v3174_v6 = vmax.f32 %v1700_v2, 0.0  ;;  %v2721_v7 = vpop.f32.mrb[40].mxu0  ;;  %v2138_v2 = vadd.f32 %v8075_v15, %v2137_v22 }
 0x1f5   : > { %v1772_v10 = vpop.f32.mrb[24].mxu1  ;;  %v7074_v11 = vpop.f32.mrb[41].mxu0 }
 0x1f6   : > { %v1773_v14 = vadd.f32 %v8075_v15, %v1772_v10  ;;  %v7009_v18 = vpop.f32.mrb[25].mxu1  ;;  %7153 = vmatmul.mubr.f32.gmra.mrb[58].mxu1 %v3174_v6 }
 0x1f7   : > { %v2284_v18 = vadd.f32 %v8075_v15, %v2283_v39  ;;  %v2576_v39 = vadd.f32 %v8075_v15, %v2575_v59 }
 0x1f8   : > { %v3175_v19 = vmax.f32 %v1773_v14, 0.0  ;;  %v2867_v23 = vpop.f32.mrb[42].mxu0  ;;  %v3180_v14 = vmax.f32 %v2138_v2, 0.0 }
 0x1f9   : > { %v1845_v26 = vpop.f32.mrb[26].mxu1  ;;  %v7084_v27 = vpop.f32.mrb[43].mxu0  ;;  %v2868_v59 = vadd.f32 %v8075_v15, %v2867_v23 }
 0x1fa   : > { %v1846_v34 = vadd.f32 %v8075_v15, %v1845_v26  ;;  %v7014_v36 = vpop.f32.mrb[27].mxu1  ;;  %7155 = vmatprep.mubr.f32.mxu1 %v3175_v19 }
 0x1fb   : > { %v3182_v36 = vmax.f32 %v2284_v18, 0.0 }
 0x1fc   : > { %v3176_v41 = vmax.f32 %v1846_v34, 0.0  ;;  %v3013_v43 = vpop.f32.mrb[44].mxu0 }
 0x1fd   : > { %v1918_v46 = vpop.f32.mrb[28].mxu1  ;;  %v7094_v47 = vpop.f32.mrb[45].mxu0 }
 0x1fe   : > { %v1919_v49 = vadd.f32 %v8075_v15, %v1918_v46  ;;  %v7019_v52 = vpop.f32.mrb[29].mxu1  ;;  %7156 = vmatmul.mubr.f32.gmra.mrb[60].mxu1 %v3176_v41  ;;  %v2430_v41 = vadd.f32 %v8075_v15, %v2429_v50  ;;  %v2722_v50 = vadd.f32 %v8075_v15, %v2721_v7  ;;  %v3014_v7 = vadd.f32 %v8075_v15, %v3013_v43 }
 0x200   : > { %v3177_v53 = vmax.f32 %v1919_v49, 0.0  ;;  %v3159_v55 = vpop.f32.mrb[46].mxu0  ;;  %v3184_v52 = vmax.f32 %v2430_v41, 0.0 }
 0x201   : > { %v1991_v56 = vpop.f32.mrb[30].mxu1  ;;  %v7104_v58 = vpop.f32.mrb[47].mxu0  ;;  %v3160_v23 = vadd.f32 %v8075_v15, %v3159_v55 }
 0x202   : > { %v1992_v62 = vadd.f32 %v8075_v15, %v1991_v56  ;;  %v7024_v63 = vpop.f32.mrb[31].mxu1  ;;  %7158 = vmatprep.mubr.f32.mxu1 %v3177_v53 }
 0x203   : > { %v3186_v63 = vmax.f32 %v2576_v39, 0.0 }
 0x204   : > { %v3178_v3 = vmax.f32 %v1992_v62, 0.0 }
 0x205   : > { %v2064_v6 = vpop.f32.mrb[32].mxu1 }
 0x206   : > { %v2065_v10 = vadd.f32 %v8075_v15, %v2064_v6  ;;  %v7029_v11 = vpop.f32.mrb[33].mxu1  ;;  %7159 = vmatmul.mubr.f32.gmra.mrb[62].mxu1 %v3178_v3 }
 0x207   : > { %v3188_v11 = vmax.f32 %v2722_v50, 0.0 }
 0x208   : > { %v3179_v19 = vmax.f32 %v2065_v10, 0.0 }
 0x209   : > { %v2210_v26 = vpop.f32.mrb[34].mxu1 }
 0x20a   : > { %v2211_v27 = vadd.f32 %v8075_v15, %v2210_v26  ;;  %v7039_v34 = vpop.f32.mrb[35].mxu1  ;;  %7161 = vmatprep.mubr.f32.mxu1 %v3179_v19 }
 0x20b   : > { %7162 = vmatmul.mubr.f32.gmra.mrb[64].mxu1 %v3180_v14 }
 0x20c   : > { %v3181_v22 = vmax.f32 %v2211_v27, 0.0  ;;  %v3190_v27 = vmax.f32 %v2868_v59, 0.0 }
 0x20d   : > { %v2356_v46 = vpop.f32.mrb[36].mxu1 }
 0x20e   : > { %v2357_v47 = vadd.f32 %v8075_v15, %v2356_v46  ;;  %v7049_v49 = vpop.f32.mrb[37].mxu1  ;;  %7164 = vmatprep.mubr.f32.mxu1 %v3181_v22  ;;  %v3192_v46 = vmax.f32 %v3014_v7, 0.0 }
 0x20f   : > { %7165 = vmatmul.mubr.f32.gmra.mrb[66].mxu1 %v3182_v36 }
 0x210   : > { %v3183_v53 = vmax.f32 %v2357_v47, 0.0 }
 0x211   : > { %v2502_v56 = vpop.f32.mrb[38].mxu1 }
 0x212   : > { %v2503_v58 = vadd.f32 %v8075_v15, %v2502_v56  ;;  %v7059_v62 = vpop.f32.mrb[39].mxu1  ;;  %7167 = vmatprep.mubr.f32.mxu1 %v3183_v53  ;;  %v3194_v53 = vmax.f32 %v3160_v23, 0.0 }
 0x213   : > { %7168 = vmatmul.mubr.f32.gmra.mrb[68].mxu1 %v3184_v52 }
 0x214   : > { %v3185_v2 = vmax.f32 %v2503_v58, 0.0 }
 0x215   : > { %v2648_v3 = vpop.f32.mrb[40].mxu1 }
 0x216   : > { %7170 = vmatprep.mubr.f32.mxu1 %v3185_v2  ;;  %v2649_v6 = vadd.f32 %v8075_v15, %v2648_v3  ;;  %v7069_v10 = vpop.f32.mrb[41].mxu1 }
 0x217   : > { %7171 = vmatmul.mubr.f32.gmra.mrb[70].mxu1 %v3186_v63 }
 0x218   : > { %v3187_v14 = vmax.f32 %v2649_v6, 0.0 }
 0x219   : > { %v2794_v18 = vpop.f32.mrb[42].mxu1 }
 0x21a   : > { %v2795_v19 = vadd.f32 %v8075_v15, %v2794_v18  ;;  %7173 = vmatprep.mubr.f32.mxu1 %v3187_v14  ;;  %v7079_v26 = vpop.f32.mrb[43].mxu1  ;;  %v8290_v18 = vld [vmem:[%s8285_s24] sm:$0xff] }
 0x21b   : > { %7174 = vmatmul.mubr.f32.gmra.mrb[72].mxu1 %v3188_v11 }
 0x21c   : > { %v3189_v34 = vmax.f32 %v2795_v19, 0.0 }
 0x21d   : > { %v2940_v36 = vpop.f32.mrb[44].mxu1 }
 0x21e   : > { %v2941_v41 = vadd.f32 %v8075_v15, %v2940_v36  ;;  %7176 = vmatprep.mubr.f32.mxu1 %v3189_v34  ;;  %v7089_v22 = vpop.f32.mrb[45].mxu1 }
 0x21f   : > { %7177 = vmatmul.mubr.f32.gmra.mrb[74].mxu1 %v3190_v27  ;;  %v8295_v27 = vld [vmem:[%s8285_s24 + $0x8] sm:$0xff] }
 0x220   : > { %v3191_v47 = vmax.f32 %v2941_v41, 0.0 }
 0x221   : > { %v3086_v49 = vpop.f32.mrb[46].mxu1 }
 0x222   : > { %v3087_v52 = vadd.f32 %v8075_v15, %v3086_v49  ;;  %7179 = vmatprep.mubr.f32.mxu1 %v3191_v47  ;;  %v7099_v39 = vpop.f32.mrb[47].mxu1 }
 0x223   : > { %7180 = vmatmul.mubr.f32.gmra.mrb[76].mxu1 %v3192_v46 }
 0x224   : > { %v3193_v56 = vmax.f32 %v3087_v52, 0.0 }
 0x226   : > { %7182 = vmatprep.mubr.f32.mxu1 %v3193_v56 }
 0x227   : > { %7183 = vmatmul.mubr.f32.gmra.mrb[78].mxu1 %v3194_v53 }
 0x228   : > { %7302 = vmatprep.mubr.msk.f32.mxu1 %vm7537_vm1, %v7536_v35 }
 0x2a1   : > { %v7139_v43 = vpop.f32.mrb[48].mxu1 }
 0x2a2   : > { %v3277_v58 = vpop.f32.mrb[49].mxu1 }
 0x2a3   : > { %7186 = vmatpush3.msra.mxu0 %v3277_v58  ;;  %v8304_v58 = vld [vmem:[%s8285_s24 + $0x10] sm:$0xff] }
 0x2a4   : > { %7188 = vmatmul.mubr.msk.f32.vlgmr.msra.gmra.mrb[48].mxu0 %vm826_vm2, %v7750_v37  ;;  %7190 = vmatprep.subr.mxu0 %v7536_v35 }
 0x2a5   : > { %7191 = vmatpush3.msra.mxu0 %v7139_v43  ;;  %7192 = vmatprep.mubr.msk.f32.mxu0 %vm7537_vm1, %v7536_v35 }
 0x2a6   : > { %7195 = vmatprep.subr.mxu0 %v7536_v35 }
 0x2a8   : > { %7193 = vmatmul.mubr.msk.f32.vlgmr.msra.gmra.mrb[50].mxu0 %vm826_vm2, %v7758_v40 }
 0x2a9   : > { %v7142_v15 = vpop.f32.mrb[50].mxu1  ;;  %7197 = vmatprep.mubr.msk.f32.mxu0 %vm7537_vm1, %v7536_v35 }
 0x2aa   : > { %v3287_v55 = vpop.f32.mrb[51].mxu1 }
 0x2ab   : > { %7196 = vmatpush3.msra.mxu0 %v3287_v55 }
 0x2ac   : > { %7198 = vmatmul.mubr.msk.f32.vlgmr.msra.gmra.mrb[52].mxu0 %vm826_vm2, %v7766_v42  ;;  %7200 = vmatprep.subr.mxu0 %v7536_v35 }
 0x2ad   : > { %7201 = vmatpush3.msra.mxu0 %v7142_v15  ;;  %7202 = vmatprep.mubr.msk.f32.mxu0 %vm7537_vm1, %v7536_v35 }
 0x2ae   : > { %7205 = vmatprep.subr.mxu0 %v7536_v35 }
 0x2b0   : > { %7203 = vmatmul.mubr.msk.f32.vlgmr.msra.gmra.mrb[54].mxu0 %vm826_vm2, %v7774_v45 }
 0x2b1   : > { %v7145_v37 = vpop.f32.mrb[52].mxu1  ;;  %7207 = vmatprep.mubr.msk.f32.mxu0 %vm7537_vm1, %v7536_v35 }
 0x2b2   : > { %v3297_v40 = vpop.f32.mrb[53].mxu1 }
 0x2b3   : > { %7206 = vmatpush3.msra.mxu0 %v3297_v40  ;;  %v7540_v40 = vmov 3  }
 0x2b4   : > { %7208 = vmatmul.mubr.msk.f32.vlgmr.msra.gmra.mrb[56].mxu0 %vm826_vm2, %v7782_v48  ;;  %7210 = vmatprep.subr.mxu0 %v7536_v35 }
 0x2b5   : > { %7211 = vmatpush3.msra.mxu0 %v7145_v37  ;;  %7212 = vmatprep.mubr.msk.f32.mxu0 %vm7537_vm1, %v7536_v35 }
 0x2b6   : > { %7215 = vmatprep.subr.mxu0 %v7536_v35 }
 0x2b8   : > { %7213 = vmatmul.mubr.msk.f32.vlgmr.msra.gmra.mrb[58].mxu0 %vm826_vm2, %v7790_v51 }
 0x2b9   : > { %v7148_v42 = vpop.f32.mrb[54].mxu1  ;;  %7217 = vmatprep.mubr.msk.f32.mxu0 %vm7537_vm1, %v7536_v35 }
 0x2ba   : > { %v3307_v45 = vpop.f32.mrb[55].mxu1 }
 0x2bb   : > { %7216 = vmatpush3.msra.mxu0 %v3307_v45 }
 0x2bc   : > { %7218 = vmatmul.mubr.msk.f32.vlgmr.msra.gmra.mrb[60].mxu0 %vm826_vm2, %v7798_v54  ;;  %7220 = vmatprep.subr.mxu0 %v7536_v35 }
 0x2bd   : > { %7221 = vmatpush3.msra.mxu0 %v7148_v42  ;;  %7222 = vmatprep.mubr.msk.f32.mxu0 %vm7537_vm1, %v7536_v35 }
 0x2be   : > { %7225 = vmatprep.subr.mxu0 %v7536_v35 }
 0x2c0   : > { %7223 = vmatmul.mubr.msk.f32.vlgmr.msra.gmra.mrb[62].mxu0 %vm826_vm2, %v7808_v57 }
 0x2c1   : > { %v7151_v48 = vpop.f32.mrb[56].mxu1  ;;  %7227 = vmatprep.mubr.msk.f32.mxu0 %vm7537_vm1, %v7536_v35 }
 0x2c2   : > { %v3317_v51 = vpop.f32.mrb[57].mxu1 }
 0x2c3   : > { %7226 = vmatpush3.msra.mxu0 %v3317_v51 }
 0x2c4   : > { %7228 = vmatmul.mubr.msk.f32.vlgmr.msra.gmra.mrb[64].mxu0 %vm826_vm2, %v7823_v61  ;;  %7230 = vmatprep.subr.mxu0 %v7536_v35 }
 0x2c5   : > { %7231 = vmatpush3.msra.mxu0 %v7151_v48  ;;  %7232 = vmatprep.mubr.msk.f32.mxu0 %vm7537_vm1, %v7536_v35 }
 0x2c6   : > { %7235 = vmatprep.subr.mxu0 %v7536_v35 }
 0x2c8   : > { %7233 = vmatmul.mubr.msk.f32.vlgmr.msra.gmra.mrb[66].mxu0 %vm826_vm2, %v7841_v1 }
 0x2c9   : > { %v7154_v54 = vpop.f32.mrb[58].mxu1  ;;  %7237 = vmatprep.mubr.msk.f32.mxu0 %vm7537_vm1, %v7536_v35 }
 0x2ca   : > { %v3327_v57 = vpop.f32.mrb[59].mxu1 }
 0x2cb   : > { %7236 = vmatpush3.msra.mxu0 %v3327_v57 }
 0x2cc   : > { %7238 = vmatmul.mubr.msk.f32.vlgmr.msra.gmra.mrb[68].mxu0 %vm826_vm2, %v7859_v5  ;;  %7240 = vmatprep.subr.mxu0 %v7536_v35 }
 0x2cd   : > { %7241 = vmatpush3.msra.mxu0 %v7154_v54  ;;  %7242 = vmatprep.mubr.msk.f32.mxu0 %vm7537_vm1, %v7536_v35 }
 0x2ce   : > { %7245 = vmatprep.subr.mxu0 %v7536_v35 }
 0x2d0   : > { %7243 = vmatmul.mubr.msk.f32.vlgmr.msra.gmra.mrb[70].mxu0 %vm826_vm2, %v7877_v9 }
 0x2d1   : > { %v7157_v61 = vpop.f32.mrb[60].mxu1  ;;  %7247 = vmatprep.mubr.msk.f32.mxu0 %vm7537_vm1, %v7536_v35 }
 0x2d2   : > { %v3337_v1 = vpop.f32.mrb[61].mxu1 }
 0x2d3   : > { %7246 = vmatpush3.msra.mxu0 %v3337_v1 }
 0x2d4   : > { %7248 = vmatmul.mubr.msk.f32.vlgmr.msra.gmra.mrb[72].mxu0 %vm826_vm2, %v7895_v13  ;;  %7250 = vmatprep.subr.mxu0 %v7536_v35 }
 0x2d5   : > { %7251 = vmatpush3.msra.mxu0 %v7157_v61  ;;  %7252 = vmatprep.mubr.msk.f32.mxu0 %vm7537_vm1, %v7536_v35 }
 0x2d6   : > { %7255 = vmatprep.subr.mxu0 %v7536_v35 }
 0x2d8   : > { %7253 = vmatmul.mubr.msk.f32.vlgmr.msra.gmra.mrb[74].mxu0 %vm826_vm2, %v7912_v17 }
 0x2d9   : > { %v7160_v5 = vpop.f32.mrb[62].mxu1  ;;  %7257 = vmatprep.mubr.msk.f32.mxu0 %vm7537_vm1, %v7536_v35 }
 0x2da   : > { %v3347_v9 = vpop.f32.mrb[63].mxu1 }
 0x2db   : > { %7256 = vmatpush3.msra.mxu0 %v3347_v9 }
 0x2dc   : > { %7258 = vmatmul.mubr.msk.f32.vlgmr.msra.gmra.mrb[76].mxu0 %vm826_vm2, %v7929_v21  ;;  %7260 = vmatprep.subr.mxu0 %v7536_v35 }
 0x2dd   : > { %7261 = vmatpush3.msra.mxu0 %v7160_v5  ;;  %7262 = vmatprep.mubr.msk.f32.mxu0 %vm7537_vm1, %v7536_v35  ;;  %v8312_v5 = vld [vmem:[%s8285_s24 + $0x18] sm:$0xff]  ;;  %s6449_s24 = scalar_lea.sflag [#allocation3], %s410_s29 }
 0x2de   : > { %v7163_v13 = vpop.f32.mrb[64].mxu1  ;;  %7265 = vmatprep.subr.mxu0 %v7536_v35 }
 0x2df   : > { %v3357_v62 = vpop.f32.mrb[65].mxu1 }
 0x2e0   : > { %7263 = vmatmul.mubr.msk.f32.vlgmr.msra.gmra.mrb[78].mxu0 %vm826_vm2, %v7946_v25 }
 0x2e1   : > { %7266 = vmatpush3.msra.mxu0 %v3357_v62  ;;  %7267 = vmatprep.mubr.msk.f32.mxu0 %vm7537_vm1, %v7536_v35 }
 0x2e2   : > { %v7166_v17 = vpop.f32.mrb[66].mxu1  ;;  %7270 = vmatprep.subr.mxu0 %v7536_v35 }
 0x2e3   : > { %v3367_v21 = vpop.f32.mrb[67].mxu1 }
 0x2e4   : > { %7268 = vmatmul.mubr.msk.f32.vlgmr.msra.gmra.mrb[80].mxu0 %vm826_vm2, %v7960_v28 }
 0x2e5   : > { %7271 = vmatpush3.msra.mxu0 %v7163_v13  ;;  %7272 = vmatprep.mubr.msk.f32.mxu0 %vm7537_vm1, %v7536_v35 }
 0x2e6   : > { %v7169_v63 = vpop.f32.mrb[68].mxu1  ;;  %7275 = vmatprep.subr.mxu0 %v7536_v35 }
 0x2e7   : > { %v3377_v50 = vpop.f32.mrb[69].mxu1 }
 0x2e8   : > { %7273 = vmatmul.mubr.msk.f32.vlgmr.msra.gmra.mrb[82].mxu0 %vm826_vm2, %v7818_v60 }
 0x2e9   : > { %7276 = vmatpush3.msra.mxu0 %v3367_v21  ;;  %7277 = vmatprep.mubr.msk.f32.mxu0 %vm7537_vm1, %v7536_v35 }
 0x2ea   : > { %v7172_v25 = vpop.f32.mrb[70].mxu1  ;;  %7280 = vmatprep.subr.mxu0 %v7536_v35 }
 0x2eb   : > { %v3387_v2 = vpop.f32.mrb[71].mxu1  ;;  %7301 = vmatpush3.msra.mxu1 %v7172_v25 }
 0x2ec   : > { %7278 = vmatmul.mubr.msk.f32.vlgmr.msra.gmra.mrb[84].mxu0 %vm826_vm2, %v7969_v29  ;;  %7303 = vmatmul.mubr.msk.f32.vlgmr.msra.gmra.mrb[80].mxu1 %vm826_vm2, %v7872_v8 }
 0x2ed   : > { %7281 = vmatpush3.msra.mxu0 %v7166_v17  ;;  %7282 = vmatprep.mubr.msk.f32.mxu0 %vm7537_vm1, %v7536_v35 }
 0x2ee   : > { %7285 = vmatprep.subr.mxu0 %v7536_v35  ;;  %v7175_v60 = vpop.f32.mrb[72].mxu1  ;;  %7310 = vmatprep.subr.mxu1 %v7536_v35 }
 0x2ef   : > { %v3397_v28 = vpop.f32.mrb[73].mxu1  ;;  %7311 = vmatpush3.msra.mxu1 %v7175_v60  ;;  %7312 = vmatprep.mubr.msk.f32.mxu1 %vm7537_vm1, %v7536_v35 }
 0x2f0   : > { %7283 = vmatmul.mubr.msk.f32.vlgmr.msra.gmra.mrb[86].mxu0 %vm826_vm2, %v7836_v0  ;;  %7313 = vmatmul.mubr.msk.f32.vlgmr.msra.gmra.mrb[82].mxu1 %vm826_vm2, %v7890_v12 }
 0x2f1   : > { %7286 = vmatpush3.msra.mxu0 %v3377_v50  ;;  %7287 = vmatprep.mubr.msk.f32.mxu0 %vm7537_vm1, %v7536_v35 }
 0x2f2   : > { %7290 = vmatprep.subr.mxu0 %v7536_v35  ;;  %v7178_v8 = vpop.f32.mrb[74].mxu1  ;;  %7320 = vmatprep.subr.mxu1 %v7536_v35 }
 0x2f3   : > { %v3407_v29 = vpop.f32.mrb[75].mxu1  ;;  %7321 = vmatpush3.msra.mxu1 %v7178_v8  ;;  %7322 = vmatprep.mubr.msk.f32.mxu1 %vm7537_vm1, %v7536_v35 }
 0x2f4   : > { %7288 = vmatmul.mubr.msk.f32.vlgmr.msra.gmra.mrb[88].mxu0 %vm826_vm2, %v7978_v30  ;;  %7323 = vmatmul.mubr.msk.f32.vlgmr.msra.gmra.mrb[84].mxu1 %vm826_vm2, %v7906_v16 }
 0x2f5   : > { %7291 = vmatpush3.msra.mxu0 %v7169_v63  ;;  %7292 = vmatprep.mubr.msk.f32.mxu0 %vm7537_vm1, %v7536_v35 }
 0x2f6   : > { %7295 = vmatprep.subr.mxu0 %v7536_v35  ;;  %v7181_v0 = vpop.f32.mrb[76].mxu1  ;;  %7330 = vmatprep.subr.mxu1 %v7536_v35 }
 0x2f7   : > { %v3417_v12 = vpop.f32.mrb[77].mxu1  ;;  %7331 = vmatpush3.msra.mxu1 %v7181_v0  ;;  %7332 = vmatprep.mubr.msk.f32.mxu1 %vm7537_vm1, %v7536_v35 }
 0x2f8   : > { %7293 = vmatmul.mubr.msk.f32.vlgmr.msra.gmra.mrb[90].mxu0 %vm826_vm2, %v7854_v4  ;;  %7333 = vmatmul.mubr.msk.f32.vlgmr.msra.gmra.mrb[86].mxu1 %vm826_vm2, %v7923_v20  ;;  %v5977_v4 = vld [vmem:[%s8496_s7] sm:$0xff]  ;;  %v5978_v20 = vld [vmem:[%s8496_s7 + $0x8] sm:$0xff] }
 0x2f9   : > { %7296 = vmatpush3.msra.mxu0 %v3387_v2  ;;  %7297 = vmatprep.mubr.msk.f32.mxu0 %vm7537_vm1, %v7536_v35 }
 0x2fa   : > { %7305 = vmatprep.subr.mxu0 %v7536_v35  ;;  %v7184_v16 = vpop.f32.mrb[78].mxu1  ;;  %7340 = vmatprep.subr.mxu1 %v7536_v35 }
 0x2fb   : > { %v3427_v30 = vpop.f32.mrb[79].mxu1  ;;  %7341 = vmatpush3.msra.mxu1 %v7184_v16  ;;  %7342 = vmatprep.mubr.msk.f32.mxu1 %vm7537_vm1, %v7536_v35 }
 0x2fc   : > { %7298 = vmatmul.mubr.msk.f32.vlgmr.msra.gmra.mrb[92].mxu0 %vm826_vm2, %v7987_v31  ;;  %7343 = vmatmul.mubr.msk.f32.vlgmr.msra.gmra.mrb[88].mxu1 %vm826_vm2, %v7940_v24  ;;  %v7403_v24 = vpack.c.bf16 %v5978_v20, %v5977_v4  ;;  %v5979_v31 = vld [vmem:[%s8496_s7 + $0x10] sm:$0xf] }
 0x2fd   : > { %7306 = vmatpush3.msra.mxu0 %v3397_v28  ;;  %7307 = vmatprep.mubr.msk.f32.mxu0 %vm7537_vm1, %v7536_v35 }
 0x2fe   : > { %7315 = vmatprep.subr.mxu0 %v7536_v35 }
 0x300   : > { %7308 = vmatmul.mubr.msk.f32.vlgmr.msra.gmra.mrb[94].mxu0 %vm826_vm2, %v7995_v32  ;;  %v7538_v32 = vmov 2  }
 0x301   : > { %7316 = vmatpush3.msra.mxu0 %v3407_v29  ;;  %7317 = vmatprep.mubr.msk.f32.mxu0 %vm7537_vm1, %v7536_v35 }
 0x302   : > { %7325 = vmatprep.subr.mxu0 %v7536_v35  ;;  %7463 = vset.pattern.permute.xlu1 %v7538_v32 }
 0x303   : > { %6209 = vperm.xlu1 %7463, %v8290_v18  }
 0x304   : > { %7318 = vmatmul.mubr.msk.f32.vlgmr.msra.gmra.mrb[96].mxu0 %vm826_vm2, %v8003_v33  ;;  %v7539_v33 = vmov 1  }
 0x305   : > { %7326 = vmatpush3.msra.mxu0 %v3417_v12  ;;  %7327 = vmatprep.mubr.msk.f32.mxu0 %vm7537_vm1, %v7536_v35 }
 0x306   : > { %7335 = vmatprep.subr.mxu0 %v7536_v35  ;;  %7462 = vset.pattern.permute.xlu0 %v7539_v33 }
 0x307   : > { %6169 = vperm.xlu0 %7462, %v8290_v18   ;;  %6213 = vperm.xlu1 %7463, %v8295_v27  }
 0x308   : > { %7328 = vmatmul.mubr.msk.f32.vlgmr.msra.gmra.mrb[98].mxu0 %vm826_vm2, %v8017_v38 }
 0x309   : > { %7336 = vmatpush3.msra.mxu0 %v3427_v30  ;;  %7337 = vmatprep.mubr.msk.f32.mxu0 %vm7537_vm1, %v7536_v35  ;;  %v8277_v35 = vld [vmem:[%s8495_s6] ss:$0 sm:$0xff] }
 0x30a   : > { %7404 = vmatprep.subr.bf16.mxu0 %v7403_v24 }
 0x30b   : > { %6173 = vperm.xlu0 %7462, %v8295_v27   ;;  %7464 = vset.pattern.permute.xlu1 %v7540_v40 }
 0x30c   : > { %7338 = vmatmul.mubr.msk.f32.vlgmr.msra.gmra.mrb[100].mxu0 %vm826_vm2, %v8031_v44  ;;  %6249 = vperm.xlu1 %7464, %v8290_v18  }
 0x30d   : > { %7406 = vmatpush3.bf16.msra.mxu0 %v7403_v24 }
 0x30e   : > { %7349 = vmatprep.subr.msk.mxu0 %vm6055_vm3, %v5979_v31 }
 0x30f   : > { %6177 = vperm.xlu0 %7462, %v8304_v58  }
 0x310   : > { %6253 = vperm.xlu1 %7464, %v8295_v27  }
 0x311   : > { %7350 = vmatpush3.msk.msra.mxu0 %vm6055_vm3, %v5979_v31 }
 0x313   : > { %6181 = vperm.xlu0 %7462, %v8312_v5  }
 0x314   : > { %7466 = vset.pattern.permute.xlu1 %v7538_v32 }
 0x315   : > { %6221 = vperm.xlu1 %7466, %v8312_v5  }
 0x317   : > { %7465 = vset.pattern.permute.xlu0 %v7538_v32 }
 0x318   : > { %6217 = vperm.xlu0 %7465, %v8304_v58  }
 0x319   : > { %7467 = vset.pattern.permute.xlu1 %v7540_v40 }
 0x31a   : > { %6257 = vperm.xlu1 %7467, %v8304_v58  }
 0x31c   : > { %7468 = vset.pattern.permute.xlu0 %v7540_v40 }
 0x31d   : > { %6261 = vperm.xlu0 %7468, %v8312_v5  }
 0x377   : > { %v3509_v38 = vpop.f32.mrb[48].mxu0 }
 0x378   : > { %v3510_v44 = vadd.f32 %v8277_v35, %v3509_v38  ;;  %v7189_v3 = vpop.f32.mrb[49].mxu0 }
 0x37a   : > { %v5683_v6 = vmax.f32 %v3510_v44, 0.0 }
 0x37b   : > { %v3579_v10 = vpop.f32.mrb[50].mxu0 }
 0x37c   : > { %v5716_v11 = vsel %vm5715_vm4, %v5683_v6, 0.0  ;;  %v3580_v59 = vadd.f32 %v8277_v35, %v3579_v10  ;;  %v7194_v14 = vpop.f32.mrb[51].mxu0 }
 0x37d   : > { %v5717_v19 = vrot.slane %v5716_v11, 4 }
 0x37e   : > { %v5684_v26 = vmax.f32 %v3580_v59, 0.0 }
 0x37f   : > { %v5718_v7 = vadd.f32 %v5717_v19, %v5716_v11  ;;  %v3649_v34 = vpop.f32.mrb[52].mxu0 }
 0x380   : > { %v5723_v36 = vsel %vm5715_vm4, %v5684_v26, 0.0  ;;  %v3650_v41 = vadd.f32 %v8277_v35, %v3649_v34  ;;  %v7199_v22 = vpop.f32.mrb[53].mxu0 }
 0x381   : > { %v5719_v46 = vrot.slane %v5718_v7, 2  ;;  %v5724_v23 = vrot.slane %v5723_v36, 4 }
 0x382   : > { %v5685_v47 = vmax.f32 %v3650_v41, 0.0 }
 0x383   : > { %v5720_v49 = vadd.f32 %v5719_v46, %v5718_v7  ;;  %v5725_v52 = vadd.f32 %v5724_v23, %v5723_v36  ;;  %v3719_v39 = vpop.f32.mrb[54].mxu0 }
 0x384   : > { %v5730_v53 = vsel %vm5715_vm4, %v5685_v47, 0.0  ;;  %v3720_v56 = vadd.f32 %v8277_v35, %v3719_v39  ;;  %v7204_v43 = vpop.f32.mrb[55].mxu0 }
 0x385   : > { %v5721_v15 = vrot.slane %v5720_v49, 1  ;;  %v5726_v55 = vrot.slane %v5725_v52, 2  ;;  %v5731_v37 = vrot.slane %v5730_v53, 4 }
 0x386   : > { %v5686_v42 = vmax.f32 %v3720_v56, 0.0 }
 0x387   : > { %v5727_v45 = vadd.f32 %v5726_v55, %v5725_v52  ;;  %v5732_v48 = vadd.f32 %v5731_v37, %v5730_v53  ;;  %v3789_v51 = vpop.f32.mrb[56].mxu0  ;;  %v5722_v54 = vadd.f32 %v5721_v15, %v5720_v49 }
 0x388   : > { %v5737_v57 = vsel %vm5715_vm4, %v5686_v42, 0.0  ;;  %v3790_v61 = vadd.f32 %v8277_v35, %v3789_v51  ;;  %v7209_v1 = vpop.f32.mrb[57].mxu0 }
 0x389   : > { %v5728_v9 = vrot.slane %v5727_v45, 1  ;;  %v5733_v13 = vrot.slane %v5732_v48, 2  ;;  %v5738_v62 = vrot.slane %v5737_v57, 4  ;;  %v5941_v2 = vmul.f32 0.125, %v5722_v54 }
 0x38a   : > { %v5687_v17 = vmax.f32 %v3790_v61, 0.0 }
 0x38b   : > { %v5729_v21 = vadd.f32 %v5728_v9, %v5727_v45  ;;  %v5734_v63 = vadd.f32 %v5733_v13, %v5732_v48  ;;  %v5739_v50 = vadd.f32 %v5738_v62, %v5737_v57  ;;  %v3859_v25 = vpop.f32.mrb[58].mxu0  ;;  %v7541_v45 = vmov 0  }
 0x38c   : > { %v5744_v60 = vsel %vm5715_vm4, %v5687_v17, 0.0  ;;  %v3860_v28 = vadd.f32 %v8277_v35, %v3859_v25  ;;  %v7214_v8 = vpop.f32.mrb[59].mxu0  ;;  %7469 = vset.pattern.permute.xlu1 %v7541_v45  ;;  %7470 = vset.pattern.permute.xlu0 %v7541_v45 }
 0x38d   : > { %v5942_v29 = vmul.f32 0.125, %v5729_v21  ;;  %v5735_v0 = vrot.slane %v5734_v63, 1  ;;  %v5740_v12 = vrot.slane %v5739_v50, 2  ;;  %v5745_v16 = vrot.slane %v5744_v60, 4  ;;  %6146 = vperm.xlu1 %7469, %v8290_v18   ;;  %6156 = vperm.xlu0 %7470, %v8304_v58  }
 0x38e   : > { %v5688_v30 = vmax.f32 %v3860_v28, 0.0 }
 0x38f   : > { %v6013_v4 = vsel %vm6012_vm5, %v5942_v29, %v5941_v2  ;;  %v5736_v20 = vadd.f32 %v5735_v0, %v5734_v63  ;;  %v5741_v24 = vadd.f32 %v5740_v12, %v5739_v50  ;;  %v5746_v31 = vadd.f32 %v5745_v16, %v5744_v60  ;;  %v3929_v33 = vpop.f32.mrb[60].mxu0 }
 0x390   : > { %v5751_v38 = vsel %vm5715_vm4, %v5688_v30, 0.0  ;;  %v3930_v44 = vadd.f32 %v8277_v35, %v3929_v33  ;;  %v7219_v3 = vpop.f32.mrb[61].mxu0 }
 0x391   : > { %v5943_v6 = vmul.f32 0.125, %v5736_v20  ;;  %v5742_v10 = vrot.slane %v5741_v24, 1  ;;  %v5747_v11 = vrot.slane %v5746_v31, 2  ;;  %v5752_v32 = vrot.slane %v5751_v38, 4  ;;  %6151 = vperm.xlu1 %7469, %v8295_v27   ;;  %7471 = vset.pattern.permute.xlu0 %v7540_v40 }
 0x392   : > { %v5689_v59 = vmax.f32 %v3930_v44, 0.0 }
 0x393   : > { %v6015_v14 = vsel %vm6014_vm6, %v5943_v6, %v6013_v4  ;;  %v5743_v19 = vadd.f32 %v5742_v10, %v5741_v24  ;;  %v5748_v26 = vadd.f32 %v5747_v11, %v5746_v31  ;;  %v5753_v7 = vadd.f32 %v5752_v32, %v5751_v38  ;;  %v3999_v34 = vpop.f32.mrb[62].mxu0 }
 0x394   : > { %v5758_v36 = vsel %vm5715_vm4, %v5689_v59, 0.0  ;;  %v4000_v41 = vadd.f32 %v8277_v35, %v3999_v34  ;;  %v7224_v22 = vpop.f32.mrb[63].mxu0 }
 0x395   : > { %v5944_v46 = vmul.f32 0.125, %v5743_v19  ;;  %v5749_v23 = vrot.slane %v5748_v26, 1  ;;  %v5754_v47 = vrot.slane %v5753_v7, 2  ;;  %v5759_v49 = vrot.slane %v5758_v36, 4  ;;  %6161 = vperm.xlu1 %7469, %v8312_v5  }
 0x396   : > { %v5690_v52 = vmax.f32 %v4000_v41, 0.0 }
 0x397   : > { %v5750_v39 = vadd.f32 %v5749_v23, %v5748_v26  ;;  %v5755_v53 = vadd.f32 %v5754_v47, %v5753_v7  ;;  %v5760_v56 = vadd.f32 %v5759_v49, %v5758_v36  ;;  %v4069_v43 = vpop.f32.mrb[64].mxu0  ;;  %v6017_v15 = vsel %vm6016_vm7, %v5944_v46, %v6015_v14 }
 0x398   : > { %v5765_v55 = vsel %vm5715_vm4, %v5690_v52, 0.0  ;;  %v4070_v37 = vadd.f32 %v8277_v35, %v4069_v43  ;;  %v7229_v42 = vpop.f32.mrb[65].mxu0 }
 0x399   : > { %v5945_v48 = vmul.f32 0.125, %v5750_v39  ;;  %v5756_v51 = vrot.slane %v5755_v53, 1  ;;  %v5761_v54 = vrot.slane %v5760_v56, 2  ;;  %v5766_v57 = vrot.slane %v5765_v55, 4 }
 0x39a   : > { %v5691_v61 = vmax.f32 %v4070_v37, 0.0 }
 0x39b   : > { %v5757_v1 = vadd.f32 %v5756_v51, %v5755_v53  ;;  %v5762_v9 = vadd.f32 %v5761_v54, %v5760_v56  ;;  %v5767_v13 = vadd.f32 %v5766_v57, %v5765_v55  ;;  %v4139_v62 = vpop.f32.mrb[66].mxu0  ;;  %v6019_v17 = vsel %vm6018_vm8, %v5945_v48, %v6017_v15 }
 0x39c   : > { %v5772_v21 = vsel %vm5715_vm4, %v5691_v61, 0.0  ;;  %v4140_v63 = vadd.f32 %v8277_v35, %v4139_v62  ;;  %v7234_v50 = vpop.f32.mrb[67].mxu0 }
 0x39d   : > { %v5946_v25 = vmul.f32 0.125, %v5757_v1  ;;  %v5763_v2 = vrot.slane %v5762_v9, 1  ;;  %v5768_v60 = vrot.slane %v5767_v13, 2  ;;  %v5773_v28 = vrot.slane %v5772_v21, 4 }
 0x39e   : > { %v5692_v18 = vmax.f32 %v4140_v63, 0.0 }
 0x39f   : > { %v5764_v58 = vadd.f32 %v5763_v2, %v5762_v9  ;;  %v5769_v8 = vadd.f32 %v5768_v60, %v5767_v13  ;;  %v5774_v29 = vadd.f32 %v5773_v28, %v5772_v21  ;;  %v4209_v0 = vpop.f32.mrb[68].mxu0  ;;  %v6021_v12 = vsel %vm6020_vm9, %v5946_v25, %v6019_v17 }
 0x3a0   : > { %v5779_v16 = vsel %vm5715_vm4, %v5692_v18, 0.0  ;;  %v4210_v30 = vadd.f32 %v8277_v35, %v4209_v0  ;;  %v7239_v4 = vpop.f32.mrb[69].mxu0 }
 0x3a1   : > { %v5947_v20 = vmul.f32 0.125, %v5764_v58  ;;  %v5770_v24 = vrot.slane %v5769_v8, 1  ;;  %v5775_v31 = vrot.slane %v5774_v29, 2  ;;  %v5780_v33 = vrot.slane %v5779_v16, 4 }
 0x3a2   : > { %v5693_v27 = vmax.f32 %v4210_v30, 0.0 }
 0x3a3   : > { %v5771_v40 = vadd.f32 %v5770_v24, %v5769_v8  ;;  %v5776_v38 = vadd.f32 %v5775_v31, %v5774_v29  ;;  %v5781_v44 = vadd.f32 %v5780_v33, %v5779_v16  ;;  %v4279_v3 = vpop.f32.mrb[70].mxu0  ;;  %v6023_v6 = vsel %vm6022_vm10, %v5947_v20, %v6021_v12 }
 0x3a4   : > { %v5786_v10 = vsel %vm5715_vm4, %v5693_v27, 0.0  ;;  %v4280_v11 = vadd.f32 %v8277_v35, %v4279_v3  ;;  %v7244_v32 = vpop.f32.mrb[71].mxu0 }
 0x3a5   : > { %v5777_v59 = vrot.slane %v5776_v38, 1  ;;  %v5782_v14 = vrot.slane %v5781_v44, 2  ;;  %v5787_v19 = vrot.slane %v5786_v10, 4  ;;  %v5948_v26 = vmul.f32 0.125, %v5771_v40 }
 0x3a6   : > { %v5694_v7 = vmax.f32 %v4280_v11, 0.0 }
 0x3a7   : > { %v5783_v34 = vadd.f32 %v5782_v14, %v5781_v44  ;;  %v5788_v5 = vadd.f32 %v5787_v19, %v5786_v10  ;;  %v4349_v36 = vpop.f32.mrb[72].mxu0  ;;  %v6025_v41 = vsel %vm6024_vm11, %v5948_v26, %v6023_v6  ;;  %v5778_v22 = vadd.f32 %v5777_v59, %v5776_v38 }
 0x3a8   : > { %v5793_v46 = vsel %vm5715_vm4, %v5694_v7, 0.0  ;;  %v4350_v23 = vadd.f32 %v8277_v35, %v4349_v36  ;;  %v7249_v47 = vpop.f32.mrb[73].mxu0  ;;  %7351 = vmatprep.mubr.msk.f32.mxu0 %vm5715_vm4, %v6025_v41 }
 0x3a9   : > { %v5784_v49 = vrot.slane %v5783_v34, 1  ;;  %v5789_v52 = vrot.slane %v5788_v5, 2  ;;  %v5794_v39 = vrot.slane %v5793_v46, 4  ;;  %v5949_v37 = vmul.f32 0.125, %v5778_v22 }
 0x3aa   : > { %v5695_v53 = vmax.f32 %v4350_v23, 0.0 }
 0x3ab   : > { %v5785_v56 = vadd.f32 %v5784_v49, %v5783_v34  ;;  %v5790_v43 = vadd.f32 %v5789_v52, %v5788_v5  ;;  %v5795_v15 = vadd.f32 %v5794_v39, %v5793_v46  ;;  %v4419_v55 = vpop.f32.mrb[74].mxu0 }
 0x3ac   : > { %v5800_v42 = vsel %vm5715_vm4, %v5695_v53, 0.0  ;;  %v4420_v45 = vadd.f32 %v8277_v35, %v4419_v55  ;;  %v7254_v48 = vpop.f32.mrb[75].mxu0 }
 0x3ad   : > { %v5950_v51 = vmul.f32 0.125, %v5785_v56  ;;  %v5791_v54 = vrot.slane %v5790_v43, 1  ;;  %v5796_v57 = vrot.slane %v5795_v15, 2  ;;  %v5801_v61 = vrot.slane %v5800_v42, 4 }
 0x3ae   : > { %v5696_v1 = vmax.f32 %v4420_v45, 0.0 }
 0x3af   : > { %v6026_v9 = vsel %vm6012_vm5, %v5950_v51, %v5949_v37  ;;  %v5792_v13 = vadd.f32 %v5791_v54, %v5790_v43  ;;  %v5797_v62 = vadd.f32 %v5796_v57, %v5795_v15  ;;  %v5802_v17 = vadd.f32 %v5801_v61, %v5800_v42  ;;  %v4489_v21 = vpop.f32.mrb[76].mxu0 }
 0x3b0   : > { %v5807_v63 = vsel %vm5715_vm4, %v5696_v1, 0.0  ;;  %v4490_v50 = vadd.f32 %v8277_v35, %v4489_v21  ;;  %v7259_v25 = vpop.f32.mrb[77].mxu0 }
 0x3b1   : > { %v5951_v2 = vmul.f32 0.125, %v5792_v13  ;;  %v5798_v60 = vrot.slane %v5797_v62, 1  ;;  %v5803_v28 = vrot.slane %v5802_v17, 2  ;;  %v5808_v18 = vrot.slane %v5807_v63, 4 }
 0x3b2   : > { %v5697_v58 = vmax.f32 %v4490_v50, 0.0 }
 0x3b3   : > { %v6027_v8 = vsel %vm6014_vm6, %v5951_v2, %v6026_v9  ;;  %v5799_v29 = vadd.f32 %v5798_v60, %v5797_v62  ;;  %v5804_v0 = vadd.f32 %v5803_v28, %v5802_v17  ;;  %v5809_v12 = vadd.f32 %v5808_v18, %v5807_v63  ;;  %v4559_v16 = vpop.f32.mrb[78].mxu0 }
 0x3b4   : > { %v5814_v30 = vsel %vm5715_vm4, %v5697_v58, 0.0  ;;  %v4560_v4 = vadd.f32 %v8277_v35, %v4559_v16  ;;  %v7264_v20 = vpop.f32.mrb[79].mxu0 }
 0x3b5   : > { %v5952_v24 = vmul.f32 0.125, %v5799_v29  ;;  %v5805_v31 = vrot.slane %v5804_v0, 1  ;;  %v5810_v33 = vrot.slane %v5809_v12, 2  ;;  %v5815_v27 = vrot.slane %v5814_v30, 4 }
 0x3b6   : > { %v5698_v40 = vmax.f32 %v4560_v4, 0.0 }
 0x3b7   : > { %v6028_v38 = vsel %vm6016_vm7, %v5952_v24, %v6027_v8  ;;  %v5806_v44 = vadd.f32 %v5805_v31, %v5804_v0  ;;  %v5811_v3 = vadd.f32 %v5810_v33, %v5809_v12  ;;  %v5816_v6 = vadd.f32 %v5815_v27, %v5814_v30  ;;  %v4629_v10 = vpop.f32.mrb[80].mxu0 }
 0x3b8   : > { %v5821_v11 = vsel %vm5715_vm4, %v5698_v40, 0.0  ;;  %v4630_v32 = vadd.f32 %v8277_v35, %v4629_v10  ;;  %v7269_v59 = vpop.f32.mrb[81].mxu0 }
 0x3b9   : > { %v5953_v14 = vmul.f32 0.125, %v5806_v44  ;;  %v5812_v19 = vrot.slane %v5811_v3, 1  ;;  %v5817_v26 = vrot.slane %v5816_v6, 2  ;;  %v5822_v7 = vrot.slane %v5821_v11, 4 }
 0x3ba   : > { %v5699_v34 = vmax.f32 %v4630_v32, 0.0 }
 0x3bb   : > { %v5813_v5 = vadd.f32 %v5812_v19, %v5811_v3  ;;  %v5818_v36 = vadd.f32 %v5817_v26, %v5816_v6  ;;  %v5823_v41 = vadd.f32 %v5822_v7, %v5821_v11  ;;  %v6029_v22 = vsel %vm6018_vm8, %v5953_v14, %v6028_v38  ;;  %v4699_v46 = vpop.f32.mrb[82].mxu0 }
 0x3bc   : > { %v5828_v23 = vsel %vm5715_vm4, %v5699_v34, 0.0  ;;  %v4700_v47 = vadd.f32 %v8277_v35, %v4699_v46  ;;  %v7274_v49 = vpop.f32.mrb[83].mxu0 }
 0x3bd   : > { %v5954_v52 = vmul.f32 0.125, %v5813_v5  ;;  %v5819_v39 = vrot.slane %v5818_v36, 1  ;;  %v5824_v53 = vrot.slane %v5823_v41, 2  ;;  %v5829_v56 = vrot.slane %v5828_v23, 4 }
 0x3be   : > { %v5700_v43 = vmax.f32 %v4700_v47, 0.0 }
 0x3bf   : > { %v5820_v15 = vadd.f32 %v5819_v39, %v5818_v36  ;;  %v5825_v55 = vadd.f32 %v5824_v53, %v5823_v41  ;;  %v6030_v37 = vsel %vm6020_vm9, %v5954_v52, %v6029_v22  ;;  %v5830_v42 = vadd.f32 %v5829_v56, %v5828_v23  ;;  %v4769_v45 = vpop.f32.mrb[84].mxu0  ;;  %v5119_v48 = vpop.f32.mrb[80].mxu1 }
 0x3c0   : > { %v5835_v51 = vsel %vm5715_vm4, %v5700_v43, 0.0  ;;  %v4770_v54 = vadd.f32 %v8277_v35, %v4769_v45  ;;  %v7279_v57 = vpop.f32.mrb[85].mxu0  ;;  %v5120_v61 = vadd.f32 %v8277_v35, %v5119_v48  ;;  %v7304_v1 = vpop.f32.mrb[81].mxu1 }
 0x3c1   : > { %v5955_v9 = vmul.f32 0.125, %v5820_v15  ;;  %v5826_v13 = vrot.slane %v5825_v55, 1  ;;  %v5831_v62 = vrot.slane %v5830_v42, 2  ;;  %v5836_v17 = vrot.slane %v5835_v51, 4 }
 0x3c2   : > { %v5701_v21 = vmax.f32 %v4770_v54, 0.0  ;;  %v5706_v63 = vmax.f32 %v5120_v61, 0.0 }
 0x3c3   : > { %v5827_v50 = vadd.f32 %v5826_v13, %v5825_v55  ;;  %v6031_v25 = vsel %vm6022_vm10, %v5955_v9, %v6030_v37  ;;  %v5832_v2 = vadd.f32 %v5831_v62, %v5830_v42  ;;  %v5837_v60 = vadd.f32 %v5836_v17, %v5835_v51  ;;  %v4839_v28 = vpop.f32.mrb[86].mxu0  ;;  %v5259_v18 = vpop.f32.mrb[82].mxu1 }
 0x3c4   : > { %v5842_v58 = vsel %vm5715_vm4, %v5701_v21, 0.0  ;;  %v4840_v8 = vadd.f32 %v8277_v35, %v4839_v28  ;;  %v7284_v29 = vpop.f32.mrb[87].mxu0  ;;  %v5877_v0 = vsel %vm5715_vm4, %v5706_v63, 0.0  ;;  %v5260_v12 = vadd.f32 %v8277_v35, %v5259_v18  ;;  %v7314_v16 = vpop.f32.mrb[83].mxu1 }
 0x3c5   : > { %v5956_v30 = vmul.f32 0.125, %v5827_v50  ;;  %v5833_v4 = vrot.slane %v5832_v2, 1  ;;  %v5838_v20 = vrot.slane %v5837_v60, 2  ;;  %v5843_v24 = vrot.slane %v5842_v58, 4 }
 0x3c6   : > { %v5702_v31 = vmax.f32 %v4840_v8, 0.0  ;;  %v5878_v33 = vrot.slane %v5877_v0, 4  ;;  %v5708_v27 = vmax.f32 %v5260_v12, 0.0 }
 0x3c7   : > { %v6032_v40 = vsel %vm6024_vm11, %v5956_v30, %v6031_v25  ;;  %v5834_v38 = vadd.f32 %v5833_v4, %v5832_v2  ;;  %v5839_v44 = vadd.f32 %v5838_v20, %v5837_v60  ;;  %v5844_v3 = vadd.f32 %v5843_v24, %v5842_v58  ;;  %v4909_v6 = vpop.f32.mrb[88].mxu0  ;;  %v5399_v10 = vpop.f32.mrb[84].mxu1 }
 0x3c8   : > { %7352 = vmatmul.mubr.msk.f32.vlgmr.msra.gmra.mrb[102].mxu0 %vm5715_vm4, %v6032_v40  ;;  %v5849_v11 = vsel %vm5715_vm4, %v5702_v31, 0.0  ;;  %v4910_v32 = vadd.f32 %v8277_v35, %v4909_v6  ;;  %v7289_v59 = vpop.f32.mrb[89].mxu0  ;;  %v5879_v14 = vadd.f32 %v5878_v33, %v5877_v0  ;;  %v5891_v19 = vsel %vm5715_vm4, %v5708_v27, 0.0  ;;  %v7324_v26 = vpop.f32.mrb[85].mxu1 }
 0x3c9   : > { %v5840_v7 = vrot.slane %v5839_v44, 1  ;;  %v5845_v34 = vrot.slane %v5844_v3, 2  ;;  %v5850_v5 = vrot.slane %v5849_v11, 4  ;;  %v5892_v22 = vrot.slane %v5891_v19, 4 }
 0x3ca   : > { %v5703_v36 = vmax.f32 %v4910_v32, 0.0  ;;  %v5880_v41 = vrot.slane %v5879_v14, 2  ;;  %v5400_v46 = vadd.f32 %v8277_v35, %v5399_v10  ;;  %v5957_v23 = vmul.f32 0.125, %v5834_v38 }
 0x3cb   : > { %v5841_v47 = vadd.f32 %v5840_v7, %v5839_v44  ;;  %v5846_v49 = vadd.f32 %v5845_v34, %v5844_v3  ;;  %v5851_v52 = vadd.f32 %v5850_v5, %v5849_v11  ;;  %v4979_v39 = vpop.f32.mrb[90].mxu0  ;;  %v5539_v53 = vpop.f32.mrb[86].mxu1  ;;  %v5893_v37 = vadd.f32 %v5892_v22, %v5891_v19 }
 0x3cc   : > { %v5856_v56 = vsel %vm5715_vm4, %v5703_v36, 0.0  ;;  %v4980_v43 = vadd.f32 %v8277_v35, %v4979_v39  ;;  %v7294_v15 = vpop.f32.mrb[91].mxu0  ;;  %v5881_v55 = vadd.f32 %v5880_v41, %v5879_v14  ;;  %v7334_v42 = vpop.f32.mrb[87].mxu1  ;;  %v5710_v1 = vmax.f32 %v5400_v46, 0.0 }
 0x3cd   : > { %v5958_v45 = vmul.f32 0.125, %v5841_v47  ;;  %v5847_v48 = vrot.slane %v5846_v49, 1  ;;  %v5852_v51 = vrot.slane %v5851_v52, 2  ;;  %v5857_v54 = vrot.slane %v5856_v56, 4 }
 0x3ce   : > { %v5704_v57 = vmax.f32 %v4980_v43, 0.0  ;;  %v5894_v61 = vrot.slane %v5893_v37, 2  ;;  %v5882_v60 = vrot.slane %v5881_v55, 1  ;;  %v5905_v12 = vsel %vm5715_vm4, %v5710_v1, 0.0 }
 0x3cf   : > { %v6033_v9 = vsel %vm6012_vm5, %v5958_v45, %v5957_v23  ;;  %v5848_v13 = vadd.f32 %v5847_v48, %v5846_v49  ;;  %v5853_v62 = vadd.f32 %v5852_v51, %v5851_v52  ;;  %v5858_v17 = vadd.f32 %v5857_v54, %v5856_v56  ;;  %v5049_v21 = vpop.f32.mrb[92].mxu0  ;;  %v5679_v63 = vpop.f32.mrb[88].mxu1 }
 0x3d0   : > { %v5863_v50 = vsel %vm5715_vm4, %v5704_v57, 0.0  ;;  %v5050_v25 = vadd.f32 %v8277_v35, %v5049_v21  ;;  %v7299_v2 = vpop.f32.mrb[93].mxu0  ;;  %v7344_v28 = vpop.f32.mrb[89].mxu1  ;;  %v5895_v29 = vadd.f32 %v5894_v61, %v5893_v37  ;;  %v5540_v16 = vadd.f32 %v8277_v35, %v5539_v53 }
 0x3d1   : > { %v5959_v18 = vmul.f32 0.125, %v5848_v13  ;;  %v5859_v58 = vrot.slane %v5858_v17, 2  ;;  %v5864_v8 = vrot.slane %v5863_v50, 4  ;;  %v5854_v4 = vrot.slane %v5853_v62, 1 }
 0x3d2   : > { %v5705_v0 = vmax.f32 %v5050_v25, 0.0  ;;  %v5906_v38 = vrot.slane %v5905_v12, 4  ;;  %v8394_v6 = vadd.f32 %v5882_v60, %v5881_v55  ;;  %v5896_v10 = vrot.slane %v5895_v29, 1 }
 0x3d3   : > { %v8390_v30 = vsel %vm6014_vm6, %v5959_v18, %v6033_v9  ;;  %v5860_v20 = vadd.f32 %v5859_v58, %v5858_v17  ;;  %v5865_v24 = vadd.f32 %v5864_v8, %v5863_v50  ;;  %v5189_v31 = vpop.f32.mrb[94].mxu0  ;;  %v5712_v14 = vmax.f32 %v5540_v16, 0.0 }
 0x3d4   : > { %v5870_v33 = vsel %vm5715_vm4, %v5705_v0, 0.0  ;;  %v5190_v27 = vadd.f32 %v8277_v35, %v5189_v31  ;;  %v7309_v40 = vpop.f32.mrb[95].mxu0  ;;  %v5907_v59 = vadd.f32 %v5906_v38, %v5905_v12  ;;  %v5855_v19 = vadd.f32 %v5854_v4, %v5853_v62 }
 0x3d5   : > { %v5866_v44 = vrot.slane %v5865_v24, 2  ;;  %v5871_v3 = vrot.slane %v5870_v33, 4  ;;  %v5861_v11 = vrot.slane %v5860_v20, 1  ;;  %v5680_v5 = vadd.f32 %v8277_v35, %v5679_v63 }
 0x3d6   : > { %v5707_v32 = vmax.f32 %v5190_v27, 0.0  ;;  %v5908_v46 = vrot.slane %v5907_v59, 2  ;;  %v5919_v23 = vsel %vm5715_vm4, %v5712_v14, 0.0  ;;  %v5897_v39 = vadd.f32 %v5896_v10, %v5895_v29 }
 0x3d7   : > { %v5867_v26 = vadd.f32 %v5866_v44, %v5865_v24  ;;  %v5872_v7 = vadd.f32 %v5871_v3, %v5870_v33  ;;  %v5329_v34 = vpop.f32.mrb[96].mxu0  ;;  %v5862_v53 = vadd.f32 %v5861_v11, %v5860_v20  ;;  %v5920_v43 = vrot.slane %v5919_v23, 4 }
 0x3d8   : > { %v5884_v36 = vsel %vm5715_vm4, %v5707_v32, 0.0  ;;  %v5330_v41 = vadd.f32 %v8277_v35, %v5329_v34  ;;  %v7319_v22 = vpop.f32.mrb[97].mxu0  ;;  %v5714_v15 = vmax.f32 %v5680_v5, 0.0  ;;  %v5960_v55 = vmul.f32 0.125, %v5855_v19 }
 0x3d9   : > { %v5868_v47 = vrot.slane %v5867_v26, 1  ;;  %v5873_v49 = vrot.slane %v5872_v7, 2  ;;  %v5885_v52 = vrot.slane %v5884_v36, 4  ;;  %v5909_v45 = vadd.f32 %v5908_v46, %v5907_v59 }
 0x3da   : > { %v5709_v56 = vmax.f32 %v5330_v41, 0.0  ;;  %v5921_v1 = vadd.f32 %v5920_v43, %v5919_v23  ;;  %v5966_v62 = vmul.f32 0.125, %v5897_v39  ;;  %v5961_v21 = vmul.f32 0.125, %v5862_v53 }
 0x3db   : > { %v5874_v37 = vadd.f32 %v5873_v49, %v5872_v7  ;;  %v5886_v42 = vadd.f32 %v5885_v52, %v5884_v36  ;;  %v5469_v48 = vpop.f32.mrb[98].mxu0  ;;  %v5869_v51 = vadd.f32 %v5868_v47, %v5867_v26  ;;  %v5933_v25 = vsel %vm5715_vm4, %v5714_v15, 0.0 }
 0x3dc   : > { %v5898_v54 = vsel %vm5715_vm4, %v5709_v56, 0.0  ;;  %v5470_v57 = vadd.f32 %v8277_v35, %v5469_v48  ;;  %v7329_v61 = vpop.f32.mrb[99].mxu0  ;;  %v5922_v50 = vrot.slane %v5921_v1, 2  ;;  %v5934_v58 = vrot.slane %v5933_v25, 4 }
 0x3dd   : > { %v5875_v9 = vrot.slane %v5874_v37, 1  ;;  %v5887_v13 = vrot.slane %v5886_v42, 2  ;;  %v5899_v17 = vrot.slane %v5898_v54, 4  ;;  %v5962_v8 = vmul.f32 0.125, %v5869_v51 }
 0x3de   : > { %v5711_v63 = vmax.f32 %v5470_v57, 0.0  ;;  %v5910_v29 = vrot.slane %v5909_v45, 1  ;;  %v5923_v31 = vadd.f32 %v5922_v50, %v5921_v1  ;;  %v5935_v40 = vadd.f32 %v5934_v58, %v5933_v25 }
 0x3df   : > { %v5876_v2 = vadd.f32 %v5875_v9, %v5874_v37  ;;  %v5888_v60 = vadd.f32 %v5887_v13, %v5886_v42  ;;  %v5900_v28 = vadd.f32 %v5899_v17, %v5898_v54  ;;  %v5609_v18 = vpop.f32.mrb[100].mxu0  ;;  %v6035_v38 = vsel %vm6016_vm7, %v5960_v55, %v8390_v30 }
 0x3e0   : > { %v5912_v0 = vsel %vm5715_vm4, %v5711_v63, 0.0  ;;  %v5610_v12 = vadd.f32 %v8277_v35, %v5609_v18  ;;  %v7339_v16 = vpop.f32.mrb[101].mxu0  ;;  %v6036_v11 = vsel %vm6018_vm8, %v5961_v21, %v6035_v38  ;;  %v5936_v59 = vrot.slane %v5935_v40, 2  ;;  %v6210_v21 = vpop.permute.xlu1 %6209 }
 0x3e1   : > { %v5889_v4 = vrot.slane %v5888_v60, 1  ;;  %v5901_v20 = vrot.slane %v5900_v28, 2  ;;  %v5913_v24 = vrot.slane %v5912_v0, 4  ;;  %v5963_v33 = vmul.f32 0.125, %v5876_v2  ;;  %v6170_v63 = vpop.permute.xlu0 %6169 }
 0x3e2   : > { %v5713_v27 = vmax.f32 %v5610_v12, 0.0  ;;  %v5964_v35 = vmul.f32 0.125, %v8394_v6  ;;  %v6037_v14 = vsel %vm6020_vm9, %v5962_v8, %v6036_v11  ;;  %v5911_v5 = vadd.f32 %v5910_v29, %v5909_v45  ;;  %v6304_v12 = vld [vmem:[%s8498_s9 + $0x8] sm:$0x3] }
 0x3e3   : > { %v5890_v44 = vadd.f32 %v5889_v4, %v5888_v60  ;;  %v5902_v3 = vadd.f32 %v5901_v20, %v5900_v28  ;;  %v5914_v10 = vadd.f32 %v5913_v24, %v5912_v0  ;;  %v5924_v36 = vrot.slane %v5923_v31, 1  ;;  %v6303_v0 = vld [vmem:[%s8498_s9] sm:$0xff] }
 0x3e4   : > { %v5926_v32 = vsel %vm5715_vm4, %v5713_v27, 0.0  ;;  %v5937_v41 = vadd.f32 %v5936_v59, %v5935_v40  ;;  %v6038_v30 = vsel %vm6022_vm10, %v5963_v33, %v6037_v14  ;;  %v5968_v53 = vmul.f32 0.125, %v5911_v5  ;;  %v6214_v50 = vpop.permute.xlu1 %6213 }
 0x3e5   : > { %v5965_v19 = vmul.f32 0.125, %v5890_v44  ;;  %v5903_v26 = vrot.slane %v5902_v3, 1  ;;  %v5915_v7 = vrot.slane %v5914_v10, 2  ;;  %v5927_v34 = vrot.slane %v5926_v32, 4  ;;  %v6174_v25 = vpop.permute.xlu0 %6173 }
 0x3e6   : > { %v6039_v49 = vsel %vm6024_vm11, %v5964_v35, %v6038_v30  ;;  %v5925_v56 = vadd.f32 %v5924_v36, %v5923_v31  ;;  %v5938_v43 = vrot.slane %v5937_v41, 1  ;;  %v7407_v16 = vpack.c.bf16 %v6304_v12, %v6303_v0 }
 0x3e7   : > { %v6040_v22 = vsel %vm6012_vm5, %v5966_v62, %v5965_v19  ;;  %v5904_v46 = vadd.f32 %v5903_v26, %v5902_v3  ;;  %v5916_v23 = vadd.f32 %v5915_v7, %v5914_v10  ;;  %v5928_v47 = vadd.f32 %v5927_v34, %v5926_v32  ;;  %7354 = vmatprep.mubr.msk.f32.mxu0 %vm5715_vm4, %v6039_v49 }
 0x3e8   : > { %v5970_v51 = vmul.f32 0.125, %v5925_v56  ;;  %v5939_v54 = vadd.f32 %v5938_v43, %v5937_v41  ;;  %v6250_v18 = vpop.permute.xlu1 %6249  ;;  %7409 = vmatprep.subr.msk.bf16.mxu1 %vm7408_vm14, %v7407_v16  ;;  %v6659_v56 = vld [vmem:[%s8497_s8] ss:$0 sm:$0xff] }
 0x3e9   : > { %v5967_v52 = vmul.f32 0.125, %v5904_v46  ;;  %v5917_v6 = vrot.slane %v5916_v23, 1  ;;  %v5929_v39 = vrot.slane %v5928_v47, 2  ;;  %7412 = vmatpush3.bf16.msk.msra.mxu1 %vm7408_vm14, %v7407_v16  ;;  %v6178_v31 = vpop.permute.xlu0 %6177 }
 0x3ea   : > { %v5972_v13 = vmul.f32 0.125, %v5939_v54 }
 0x3eb   : > { %v6041_v15 = vsel %vm6014_vm6, %v5967_v52, %v6040_v22  ;;  %v5918_v55 = vadd.f32 %v5917_v6, %v5916_v23  ;;  %v5930_v37 = vadd.f32 %v5929_v39, %v5928_v47 }
 0x3ec   : > { %v6042_v42 = vsel %vm6016_vm7, %v5968_v53, %v6041_v15  ;;  %v6254_v4 = vpop.permute.xlu1 %6253 }
 0x3ed   : > { %v5969_v45 = vmul.f32 0.125, %v5918_v55  ;;  %v5931_v48 = vrot.slane %v5930_v37, 1  ;;  %v6182_v33 = vpop.permute.xlu0 %6181 }
 0x3ef   : > { %v5932_v57 = vadd.f32 %v5931_v48, %v5930_v37  ;;  %v6043_v61 = vsel %vm6018_vm8, %v5969_v45, %v6042_v42 }
 0x3f0   : > { %v6044_v1 = vsel %vm6020_vm9, %v5970_v51, %v6043_v61  ;;  %v6222_v40 = vpop.permute.xlu1 %6221 }
 0x3f1   : > { %v5971_v9 = vmul.f32 0.125, %v5932_v57  ;;  %v6218_v27 = vpop.permute.xlu0 %6217 }
 0x3f3   : > { %v6045_v62 = vsel %vm6022_vm10, %v5971_v9, %v6044_v1 }
 0x3f4   : > { %v6046_v17 = vsel %vm6024_vm11, %v5972_v13, %v6045_v62  ;;  %v6258_v14 = vpop.permute.xlu1 %6257 }
 0x3f5   : > { %7355 = vmatmul.mubr.msk.f32.gmra.mrb[104].mxu0 %vm5715_vm4, %v6046_v17  ;;  %v6262_v11 = vpop.permute.xlu0 %6261 }
 0x40c   : > { %v6147_v26 = vpop.permute.xlu1 %6146  ;;  %v6157_v34 = vpop.permute.xlu0 %6156 }
 0x410   : > { %v6152_v7 = vpop.permute.xlu1 %6151 }
 0x414   : > { %v6162_v5 = vpop.permute.xlu1 %6161 }
 0x49b   : > { %v7353_v2 = vpop.f32.mrb[102].mxu0 }
 0x49c   : > { %v6125_v60 = vpop.f32.mrb[103].mxu0  ;;  %v6185_v28 = vmul.f32 %v7353_v2, %v6174_v25  ;;  %v6225_v8 = vmul.f32 %v7353_v2, %v6214_v50  ;;  %v6265_v20 = vmul.f32 %v7353_v2, %v6254_v4  ;;  %v6165_v30 = vmul.f32 %v7353_v2, %v6152_v7 }
 0x49d   : > { %v6184_v58 = vmul.f32 %v6170_v63, %v6125_v60  ;;  %v6224_v29 = vmul.f32 %v6210_v21, %v6125_v60  ;;  %v6264_v24 = vmul.f32 %v6250_v18, %v6125_v60  ;;  %v6164_v23 = vmul.f32 %v6147_v26, %v6125_v60 }
 0x49e   : > { %6194 = vrot.lane.b32.xlu0 %v6185_v28, %s7542_s25 }
 0x49f   : > { %6192 = vrot.lane.b32.xlu1 %v6184_v58, %s7542_s25  ;;  %v6660_v58 = vld [vmem:[%s8499_s10] ss:$0 sm:$0xff] }
 0x4a2   : > { %6234 = vrot.lane.b32.xlu0 %v6225_v8, %s7543_s15 }
 0x4a3   : > { %6232 = vrot.lane.b32.xlu1 %v6224_v29, %s7543_s15 }
 0x4a6   : > { %6274 = vrot.lane.b32.xlu0 %v6265_v20, %s7545_s16 }
 0x4aa   : > { %6272 = vrot.lane.b32.xlu0 %v6264_v24, %s7545_s16 }
 0x4c8   : > { %v7356_v38 = vpop.f32.mrb[104].mxu0 }
 0x4c9   : > { %v6227_v44 = vmul.f32 %v7356_v38, %v6222_v40  ;;  %v6187_v3 = vmul.f32 %v7356_v38, %v6182_v33  ;;  %v6135_v10 = vpop.f32.mrb[105].mxu0  ;;  %v6267_v32 = vmul.f32 %v7356_v38, %v6262_v11  ;;  %v6167_v48 = vmul.f32 %v7356_v38, %v6162_v5 }
 0x4ca   : > { %v6186_v59 = vmul.f32 %v6178_v31, %v6135_v10  ;;  %v6226_v35 = vmul.f32 %v6218_v27, %v6135_v10  ;;  %v6266_v19 = vmul.f32 %v6258_v14, %v6135_v10  ;;  %v6166_v9 = vmul.f32 %v6157_v34, %v6135_v10 }
 0x4cb   : > { %6238 = vrot.lane.b32.xlu0 %v6227_v44, %s7543_s15  ;;  %6198 = vrot.lane.b32.xlu1 %v6187_v3, %s7542_s25 }
 0x4cf   : > { %6278 = vrot.lane.b32.xlu0 %v6267_v32, %s7545_s16  ;;  %6196 = vrot.lane.b32.xlu1 %v6186_v59, %s7542_s25 }
 0x4d3   : > { %6236 = vrot.lane.b32.xlu1 %v6226_v35, %s7543_s15  ;;  %s6462_s15 = sshll.u32 %s412_s14, 4  ;;  %s8449_s15 = int_to_ptr.vmem [resolvable:$true] %s6462_s15 }
 0x4d4   : > { %s7472_s25 = scalar_lea.vmem %s8449_s15, 64  ;;  %p7479_p1 = scmp.lt.s32.totalorder %s8449_s15, %s7477_s12 }
 0x4d5   : > { %p7473_p12 = scmp.ne.s32.totalorder %s8449_s15, %s7472_s25  ;;  %p7480_p2 = scmp.lt.s32.totalorder %s7478_s0, %s7472_s25 }
 0x4d7   : > { %6276 = vrot.lane.b32.xlu1 %v6266_v19, %s7545_s16  ;;  %p7474_p13 = pnand %p7473_p12, %p7645_p5  ;;  %p7481_p3 = por %p7480_p2, %p7479_p1 }
 0x4d9   : > { %p7475_p0 = pneg %p7474_p13 }
 0x4db   : > { %p7482_p4 = pnand %p7481_p3, %p7475_p0 }
 0x510   : > { %v6195_v36 = vpop.permute.xlu0 %6194 }
 0x511   : > { %v6193_v41 = vpop.permute.xlu1 %6192  ;;  %v6205_v46 = vadd.f32 %v6195_v36, %v6165_v30 }
 0x512   : > { %v6204_v6 = vadd.f32 %v6193_v41, %v6164_v23 }
 0x514   : > { %v6235_v22 = vpop.permute.xlu0 %6234 }
 0x515   : > { %v6245_v47 = vadd.f32 %v6235_v22, %v6205_v46  ;;  %v6233_v49 = vpop.permute.xlu1 %6232 }
 0x516   : > { %v6244_v53 = vadd.f32 %v6233_v49, %v6204_v6 }
 0x518   : > { %v6275_v52 = vpop.permute.xlu0 %6274 }
 0x519   : > { %v6285_v39 = vadd.f32 %v6275_v52, %v6245_v47 }
 0x51b   : > { %v6296_v55 = vadd.f32 %v6659_v56, %v6285_v39 }
 0x51c   : > { %v6273_v43 = vpop.permute.xlu0 %6272 }
 0x51d   : > { %v6284_v15 = vadd.f32 %v6273_v43, %v6244_v53  ;;  %v6300_v45 = vmax.f32 %v6296_v55, 0.0 }
 0x51f   : > { %v6295_v37 = vadd.f32 %v6659_v56, %v6284_v15 }
 0x521   : > { %v6299_v42 = vmax.f32 %v6295_v37, 0.0 }
 0x523   : > { %7361 = vmatprep.mubr.msk.f32.mxu1 %vm6312_vm15, %v6299_v42 }
 0x524   : > { %7362 = vmatmul.mubr.msk.f32.vlgmr.msra.gmra.mrb[90].mxu1 %vm6312_vm15, %v6300_v45 }
 0x53d   : > { %v6199_v51 = vpop.permute.xlu1 %6198  ;;  %v6239_v54 = vpop.permute.xlu0 %6238 }
 0x53e   : > { %v6207_v57 = vadd.f32 %v6199_v51, %v6167_v48 }
 0x540   : > { %v6247_v1 = vadd.f32 %v6239_v54, %v6207_v57 }
 0x541   : > { %v6197_v61 = vpop.permute.xlu1 %6196  ;;  %v6279_v13 = vpop.permute.xlu0 %6278 }
 0x542   : > { %v6206_v17 = vadd.f32 %v6197_v61, %v6166_v9  ;;  %v6287_v21 = vadd.f32 %v6279_v13, %v6247_v1 }
 0x544   : > { %v6298_v2 = vadd.f32 %v6659_v56, %v6287_v21 }
 0x545   : > { %v6237_v62 = vpop.permute.xlu1 %6236 }
 0x546   : > { %v6246_v63 = vadd.f32 %v6237_v62, %v6206_v17  ;;  %v6302_v18 = vmax.f32 %v6298_v2, 0.0 }
 0x549   : > { %v6277_v50 = vpop.permute.xlu1 %6276 }
 0x54a   : > { %v6286_v25 = vadd.f32 %v6277_v50, %v6246_v63 }
 0x54c   : > { %v6297_v60 = vadd.f32 %v6659_v56, %v6286_v25 }
 0x54e   : > { %v6301_v28 = vmax.f32 %v6297_v60, 0.0 }
 0x550   : > { %7364 = vmatprep.mubr.msk.f32.mxu1 %vm6312_vm15, %v6301_v28 }
 0x551   : > { %7365 = vmatmul.mubr.msk.f32.gmra.mrb[92].mxu1 %vm6312_vm15, %v6302_v18 }
 0x5f7   : > { %v7363_v8 = vpop.f32.mrb[90].mxu1 }
 0x5f8   : > { %v6395_v29 = vpop.f32.mrb[91].mxu1  ;;  %v6401_v12 = vadd.f32 %v7363_v8, %v6660_v58 }
 0x5f9   : > { %v6396_v0 = vadd.f32 %v6660_v58, %v6395_v29 }
 0x5fb   : > { %6414 = vxpose.xlu1.b32.start [1/4] (short) (narrow) %v6396_v0, 8 }
 0x5ff   : > { %6415 = vxpose.xlu1.b32.cont [2/4] (short) (narrow) %v6401_v12, 8 }
 0x624   : > { %v7366_v16 = vpop.f32.mrb[92].mxu1 }
 0x625   : > { %v6405_v4 = vpop.f32.mrb[93].mxu1  ;;  %v6411_v24 = vadd.f32 %v7366_v16, %v6660_v58 }
 0x626   : > { %v6406_v20 = vadd.f32 %v6660_v58, %v6405_v4 }
 0x628   : > { %6416 = vxpose.xlu1.b32.cont [3/4] (short) (narrow) %v6406_v20, 8 }
 0x62c   : > { %6417 = vxpose.xlu1.b32.end [4/4] (short) (narrow) %v6411_v24, 8 }
 0x6a0   : > { %v6430_v31 = vpop.trf.xlu1 }
 0x6a1   : > { %6447 = vst.msk [vmem:[%s412_s14] sm:$0xf] %vm6446_vm0, %v6430_v31 }
 0x6a2   : > { %7485 = shalt.err (!%p7482_p4)
}
 0x6a3   : > { %s7486_s29 = scalar_lea.hbm %s8447_s22, 64  ;;  %s7490_s16 = scalar_lea.hbm %s8500_s11, 128 }
 0x6a4   : > { %p7487_p7 = scmp.ne.s32.totalorder %s8447_s22, %s7486_s29  ;;  %p7491_p10 = scmp.lt.u32.totalorder %s8447_s22, %s8500_s11 }
 0x6a5   : > { %p7492_p11 = scmp.lt.u32.totalorder %s7490_s16, %s7486_s29  ;;  %p7494_p13 = scmp.lt.u32.totalorder %s7486_s29, %s8447_s22 }
 0x6a6   : > { %p7488_p8 = pnand %p7487_p7, %p7645_p5 }
 0x6a7   : > { %p7493_p12 = por %p7492_p11, %p7491_p10 }
 0x6a8   : > { %p7489_p9 = pneg %p7488_p8 }
 0x6a9   : > { %p7495_p0 = por %p7494_p13, %p7493_p12 }
 0x6ab   : > { %p7496_p1 = pnand %p7495_p0, %p7489_p9 }
 0x6ad   : > { %7499 = shalt.err (!%p7496_p1)
}
 0x6ae   : > { %7413 = dma.vmem_to_hbm [thread:$0]  (%p7645_p5), %s8449_s15, 64, %s8447_s22, %s6449_s24  }
 0x6af PF: > { %p7419_p2 = scmp.ge.s32.totalorder %s7534_s20, 2  ;;  %s6474_s0 = sand.u32 1, %s7522_s17  }
 0x6b0   : > { %s6475_s25 = scalar_lea.sflag [#allocation3], %s6474_s0 }
 0x6b1   : > { %p7416_p3 = pnand %p7419_p2, %p7649_p6 }
 0x6b3   : > { %7517 = dma.done.wait (!%p7416_p3), %s6475_s25, 64  }
 0x6b4   : > { %7519 = vsyncadd (!%p7416_p3), %s6475_s25, 4294967232  ;;  %p21_p4 = scmp.ge.s32.totalorder %s7632_s23, 4   ;;  %s8505_s17 = smov %s7526_s18 }
 0x6b5   : > { %s8506_s18 = smov %s7530_s19  ;;  %s8507_s19 = smov %s7643_s26 }
 0x6b6   : > { %s8508_s20 = smov %s7632_s23  ;;  %23 = sbr.rel (!%p21_p4) target bundleno = 5 (0x5), region = 105 }
 0x6bd   :  { %6480 = vsyncpa [#allocation3], 1 }
 0x6be   :  { %6482 = vsyncpa [#allocation3 + $0x1], 1 }

</bundles_post_ra>
